<compile_context>
chip_gen: v7x
topology: tpu7x:2x2x1
jax: 0.10.0
libtpu: 0.0.40
codegen_flags: <defaults>
</compile_context>

<pallas_src>
from functools import partial

import jax
import jax.numpy as jnp
from jax.experimental import pallas as pl
from jax.experimental.pallas import tpu as pltpu

# ---- sizes (small, consistent with the forward graph) -----------------------
B = 2                  # batch
NUM_SEGMENTS = 4       # args.num_segments
H = W = 16             # spatial
CIN = 3                # RGB per segment
C1 = 32                # backbone output channels (stand-in for ResNet stage width)
FEAT = 64              # branch feature dim (stand-in for 2048)
NUM_CLASS = 16         # new_fc output classes
KH = KW = 3
STRIDE = 2
OH = OW = H // STRIDE
P = OH * OW            # spatial positions after backbone
N = B * NUM_SEGMENTS   # "frames"
M = N * P              # rows of the im2col patch matrix

K_RAW = CIN * KH * KW  # 27
K_PAD = 32             # contraction dim padded to a clean multiple of 8
BR_OUT = 2 * FEAT      # 128  : [layer1 | layer2] concatenated output channels
HD_OUT = 2 * NUM_CLASS # 32   : [new_fc1 | new_fc2] block-diagonal output
PACK_W = HD_OUT + FEAT # 96   : packed output width = [cons1|cons2|avg]


# --------------------------- fused Pallas kernel ------------------------------
def _sif_fused_kernel(patches_ref, bw_ref, bb_ref, lw_ref, lb_ref,
                      hw_ref, hb_ref, o_ref):
    # patches: (M, K_PAD) bf16    bw: (K_PAD, C1) bf16     bb: (1, C1) f32
    # lw:      (C1, BR_OUT) bf16  lb: (1, BR_OUT) f32          (layer1 || layer2)
    # hw:      (BR_OUT, HD_OUT) bf16 block-diagonal  hb: (1, HD_OUT) f32
    # o:       (B, PACK_W) f32 packed = [cons1(16) | cons2(16) | avg(64)]

    # backbone: conv(im2col) + folded BN + bias + ReLU   (bf16 MXU, f32 acc) -> (M, C1)
    spatial = jnp.dot(patches_ref[...], bw_ref[...],
                      preferred_element_type=jnp.float32) + bb_ref[...]
    spatial = jnp.maximum(spatial, 0.0)

    # layer1 || layer2: one 128-wide 1x1-conv matmul + ReLU -> (M, 128) f32
    h = jnp.dot(spatial.astype(jnp.bfloat16), lw_ref[...],
                preferred_element_type=jnp.float32) + lb_ref[...]
    h = jnp.maximum(h, 0.0)

    # Global avgpool + segment consensus collapsed by linearity (mean and the
    # affine heads commute): one mean over all SEG*P rows of each batch.
    # 512 sublanes -> 2 groups of 256: multiple-of-8 split, no relayout.
    batch_pool = jnp.mean(h.reshape(B, NUM_SEGMENTS * P, BR_OUT), axis=1)  # (B, 128)

    # fc1/fc2 are nn.Dropout in the TSN base model -> identity in eval mode.
    # TODO(synk): train-mode dropout not implemented.

    # new_fc1 / new_fc2 block-diagonal head; consensus already folded in. -> (B, 32)
    cons = jnp.dot(batch_pool.astype(jnp.bfloat16), hw_ref[...],
                   preferred_element_type=jnp.float32) + hb_ref[...]
    # output_avg: segment mean of layer1 pooled features -> (B, 64)
    avg = batch_pool[:, :FEAT]

    # packed output row: [cons1 | cons2 | avg]  (single concat, no zeros vreg)
    o_ref[...] = jnp.concatenate([cons, avg], axis=-1)


# advisory cost hint so XLA schedules/overlaps the tiny call sensibly
_FLOPS = 2 * M * K_PAD * C1 + 2 * M * C1 * BR_OUT + 2 * B * BR_OUT * HD_OUT
_BYTES = (M * K_PAD * 2                          # patches (bf16)
          + K_PAD * C1 * 2 + C1 * 4              # backbone w (bf16) + b (f32)
          + C1 * BR_OUT * 2 + BR_OUT * 4         # branch w (bf16) + b (f32)
          + BR_OUT * HD_OUT * 2 + HD_OUT * 4     # head w (bf16) + b (f32)
          + B * PACK_W * 4)                      # packed output (f32)


def _sif_fused(patches, params):
    vmem = pl.BlockSpec(memory_space=pltpu.MemorySpace.VMEM)
    bf16 = jnp.bfloat16
    return pl.pallas_call(
        _sif_fused_kernel,
        out_shape=jax.ShapeDtypeStruct((B, PACK_W), jnp.float32),
        in_specs=[vmem] * 7,
        out_specs=vmem,
        compiler_params=pltpu.CompilerParams(
            # let XLA fuse the im2col producer graph into this call (input 0 only)
            allow_input_fusion=[True, False, False, False, False, False, False]),
        cost_estimate=pl.CostEstimate(flops=_FLOPS, transcendentals=0,
                                      bytes_accessed=_BYTES),
    )(patches.astype(bf16),
      params["backbone_w"].astype(bf16), params["backbone_b"],
      params["branch_w"].astype(bf16), params["branch_b"],
      params["head_w"].astype(bf16), params["head_b"])


# ------------------------------ JAX glue -------------------------------------
def _im2col(x_nchw):
    # x: (N, CIN, H, W) -> (M, K_PAD); tap ordering (cin, kh, kw), zero-padded K.
    # TODO(synk): at real 224x224 scale, move patch extraction in-kernel (strided
    # DMA per row tile) or use lax.conv for the backbone; fine at toy size.
    xp = jnp.pad(x_nchw, ((0, 0), (0, 0), (1, 1), (1, 1)))
    taps = []
    for dy in range(KH):
        for dx in range(KW):
            taps.append(xp[:, :, dy:dy + H:STRIDE, dx:dx + W:STRIDE])  # (N,CIN,OH,OW)
    cols = jnp.stack(taps, axis=2)                  # (N, CIN, KH*KW, OH, OW)
    cols = cols.transpose(0, 3, 4, 1, 2)            # (N, OH, OW, CIN, KH*KW)
    cols = cols.reshape(M, K_RAW)
    return jnp.pad(cols, ((0, 0), (0, K_PAD - K_RAW)))   # zero-pad K: 27 -> 32


def init_params(key):
    ks = jax.random.split(key, 10)
    p = {}
    # backbone conv (OIHW) + frozen BatchNorm folded in (eval mode)
    conv_w = jax.random.normal(ks[0], (C1, CIN, KH, KW), jnp.float32) * 0.1
    conv_b = jax.random.normal(ks[1], (C1,), jnp.float32) * 0.1
    gamma = 1.0 + 0.1 * jax.random.normal(ks[2], (C1,), jnp.float32)
    beta = 0.1 * jax.random.normal(ks[3], (C1,), jnp.float32)
    mean = 0.1 * jax.random.normal(ks[4], (C1,), jnp.float32)
    var = 1.0 + 0.1 * jax.random.normal(ks[5], (C1,), jnp.float32) ** 2
    scale = gamma / jnp.sqrt(var + 1e-5)
    w_eff = conv_w * scale[:, None, None, None]
    b_eff = (conv_b - mean) * scale + beta
    bw = w_eff.transpose(1, 2, 3, 0).reshape(K_RAW, C1)
    p["backbone_w"] = jnp.pad(bw, ((0, K_PAD - K_RAW), (0, 0)))  # zero-pad K rows
    p["backbone_b"] = b_eff.reshape(1, C1)

    # layer1 / layer2 are copy.deepcopy of the same module => identical params.
    lw = jax.random.normal(ks[6], (C1, FEAT), jnp.float32) * 0.1
    lb = jax.random.normal(ks[7], (1, FEAT), jnp.float32) * 0.1
    layer1_w, layer2_w = lw, lw
    layer1_b, layer2_b = lb, lb
    # Pack into one lane-dense (C1, 128) weight: [layer1 | layer2].
    p["branch_w"] = jnp.concatenate([layer1_w, layer2_w], axis=-1)   # (32, 128)
    p["branch_b"] = jnp.concatenate([layer1_b, layer2_b], axis=-1)   # (1, 128)

    # new_fc1 / new_fc2 are copy.deepcopy of new_fc => identical params.
    nw = jax.random.normal(ks[8], (FEAT, NUM_CLASS), jnp.float32) * 0.1
    nb = jax.random.normal(ks[9], (1, NUM_CLASS), jnp.float32) * 0.1
    new_fc1_w, new_fc2_w = nw, nw
    new_fc1_b, new_fc2_b = nb, nb
    # Block-diagonal pack: pool[:, :64] -> logits[:, :16] (fc1), pool[:, 64:] ->
    # logits[:, 16:] (fc2), in one matmul.
    hw = jnp.zeros((BR_OUT, HD_OUT), jnp.float32)
    hw = hw.at[:FEAT, :NUM_CLASS].set(new_fc1_w)
    hw = hw.at[FEAT:, NUM_CLASS:].set(new_fc2_w)
    p["head_w"] = hw                                                 # (128, 32)
    p["head_b"] = jnp.concatenate([new_fc1_b, new_fc2_b], axis=-1)   # (1, 32)
    return p


def sif_net_forward(params, x):
    # x: (B, NUM_SEGMENTS*3, H, W)  -- PyTorch NCHW input
    xs = x.reshape(-1, CIN, H, W)          # x.view((-1, 3) + x.size()[-2:])
    patches = _im2col(xs)                  # (M, K_PAD)
    packed = _sif_fused(patches, params)   # (B, 96) single fused kernel
    cons1 = packed[:, :NUM_CLASS]                                   # consensus1
    cons2 = packed[:, NUM_CLASS:HD_OUT]                             # consensus2
    avg = packed[:, HD_OUT:HD_OUT + FEAT]                           # output_avg
    return cons1, cons2, avg


# ---------------------- pure-JAX reference (sanity check) --------------------
def _reference_forward(params, x, *, mxu_bf16=False):
    # Faithful to the PyTorch graph (per-frame pool, per-frame logits, consensus
    # after the heads).  With mxu_bf16=True, applies the same operand
    # quantization the kernel uses (bf16 operands, f32 accumulation).
    if mxu_bf16:
        def dot(a, b):
            return jnp.dot(a.astype(jnp.bfloat16), b.astype(jnp.bfloat16),
                           preferred_element_type=jnp.float32)
    else:
        hp = jax.lax.Precision.HIGHEST
        def dot(a, b):
            return jnp.dot(a, b, precision=hp, preferred_element_type=jnp.float32)

    xs = x.reshape(-1, CIN, H, W)
    patches = _im2col(xs)
    spatial = jnp.maximum(dot(patches, params["backbone_w"]) + params["backbone_b"], 0.0)
    l1_w, l2_w = params["branch_w"][:, :FEAT], params["branch_w"][:, FEAT:]
    l1_b, l2_b = params["branch_b"][:, :FEAT], params["branch_b"][:, FEAT:]
    h1 = jnp.maximum(dot(spatial, l1_w) + l1_b, 0.0)
    h2 = jnp.maximum(dot(spatial, l2_w) + l2_b, 0.0)
    p1 = jnp.mean(h1.reshape(N, P, FEAT), axis=1)
    p2 = jnp.mean(h2.reshape(N, P, FEAT), axis=1)
    f1_w = params["head_w"][:FEAT, :NUM_CLASS]
    f2_w = params["head_w"][FEAT:, NUM_CLASS:]
    f1_b = params["head_b"][:, :NUM_CLASS]
    f2_b = params["head_b"][:, NUM_CLASS:]
    lg1 = dot(p1, f1_w) + f1_b
    lg2 = dot(p2, f2_w) + f2_b
    cons1 = jnp.mean(lg1.reshape(B, NUM_SEGMENTS, NUM_CLASS), axis=1)
    cons2 = jnp.mean(lg2.reshape(B, NUM_SEGMENTS, NUM_CLASS), axis=1)
    avg = jnp.mean(p1.reshape(B, NUM_SEGMENTS, FEAT), axis=1)
    return cons1, cons2, avg


if __name__ == "__main__":
    key = jax.random.PRNGKey(0)
    k_x, k_p = jax.random.split(key)
    x = jax.random.normal(k_x, (B, NUM_SEGMENTS * 3, H, W), jnp.float32)
    params = init_params(k_p)

    fwd = jax.jit(sif_net_forward)
    out1, out2, out_avg = fwd(params, x)
    jax.block_until_ready((out1, out2, out_avg))

    assert out1.shape == (B, NUM_CLASS)
    assert out2.shape == (B, NUM_CLASS)
    assert out_avg.shape == (B, FEAT)

    # Structural check: reference with the same bf16 operand quantization as the
    # kernel.  Remaining differences are only the linearity collapse / f32
    # summation-order reorderings plus the head-input quantization point.
    rb = jax.jit(partial(_reference_forward, mxu_bf16=True))(params, x)
    for a, b in zip((out1, out2, out_avg), rb):
        err = float(jnp.max(jnp.abs(a - b)))
        assert err < 5e-3, f"mismatch vs bf16-matched reference: {err}"

    # Fidelity check vs the full-f32 (PyTorch-faithful) reference: the only
    # extra error source is the bf16 MXU-operand quantization.
    rf = jax.jit(_reference_forward)(params, x)
    for a, b in zip((out1, out2, out_avg), rf):
        err = float(jnp.max(jnp.abs(a - b)))
        assert err < 5e-2, f"mismatch vs f32 reference: {err}"

    print("KERNEL_OK")
</pallas_src>

<mosaic_0001>
module attributes {stable_mosaic.version = 11 : i64} {
  func.func @_sif_fused_kernel(%arg0: memref<512x32xbf16, #tpu.memory_space<vmem>>, %arg1: memref<32x32xbf16, #tpu.memory_space<vmem>>, %arg2: memref<1x32xf32, #tpu.memory_space<vmem>>, %arg3: memref<32x128xbf16, #tpu.memory_space<vmem>>, %arg4: memref<1x128xf32, #tpu.memory_space<vmem>>, %arg5: memref<128x32xbf16, #tpu.memory_space<vmem>>, %arg6: memref<1x32xf32, #tpu.memory_space<vmem>>, %arg7: memref<2x96xf32, #tpu.memory_space<vmem>>) attributes {dimension_semantics = [], scalar_prefetch = 0 : i64, scratch_operands = 0 : i64, tpu.core_type = #tpu.core_type<tc>} {
    %c0 = arith.constant 0 : index
    %c0_0 = arith.constant 0 : index
    %0 = vector.load %arg0[%c0, %c0_0] : memref<512x32xbf16, #tpu.memory_space<vmem>>, vector<512x32xbf16>
    %c0_1 = arith.constant 0 : index
    %c0_2 = arith.constant 0 : index
    %1 = vector.load %arg1[%c0_1, %c0_2] : memref<32x32xbf16, #tpu.memory_space<vmem>>, vector<32x32xbf16>
    %cst = arith.constant dense<0.000000e+00> : vector<512x32xf32>
    %2 = tpu.matmul %0, %1, %cst {dimension_numbers = #tpu.dot_dimension_numbers<[1], [0], [0], [1], [0, 0, 1, 1], [], []>} : vector<512x32xbf16>, vector<32x32xbf16>, vector<512x32xf32> -> vector<512x32xf32>
    %c0_3 = arith.constant 0 : index
    %c0_4 = arith.constant 0 : index
    %3 = vector.load %arg2[%c0_3, %c0_4] : memref<1x32xf32, #tpu.memory_space<vmem>>, vector<1x32xf32>
    %4 = vector.broadcast %3 : vector<1x32xf32> to vector<512x32xf32>
    %5 = arith.addf %2, %4 : vector<512x32xf32>
    %cst_5 = arith.constant 0.000000e+00 : f32
    %6 = vector.broadcast %cst_5 : f32 to vector<512x32xf32>
    %7 = arith.maximumf %5, %6 : vector<512x32xf32>
    %8 = arith.truncf %7 : vector<512x32xf32> to vector<512x32xbf16>
    %c0_6 = arith.constant 0 : index
    %c0_7 = arith.constant 0 : index
    %9 = vector.load %arg3[%c0_6, %c0_7] : memref<32x128xbf16, #tpu.memory_space<vmem>>, vector<32x128xbf16>
    %cst_8 = arith.constant dense<0.000000e+00> : vector<512x128xf32>
    %10 = tpu.matmul %8, %9, %cst_8 {dimension_numbers = #tpu.dot_dimension_numbers<[1], [0], [0], [1], [0, 0, 1, 1], [], []>} : vector<512x32xbf16>, vector<32x128xbf16>, vector<512x128xf32> -> vector<512x128xf32>
    %c0_9 = arith.constant 0 : index
    %c0_10 = arith.constant 0 : index
    %11 = vector.load %arg4[%c0_9, %c0_10] : memref<1x128xf32, #tpu.memory_space<vmem>>, vector<1x128xf32>
    %12 = vector.broadcast %11 : vector<1x128xf32> to vector<512x128xf32>
    %13 = arith.addf %10, %12 : vector<512x128xf32>
    %cst_11 = arith.constant 0.000000e+00 : f32
    %14 = vector.broadcast %cst_11 : f32 to vector<512x128xf32>
    %15 = arith.maximumf %13, %14 : vector<512x128xf32>
    %16 = vector.shape_cast %15 : vector<512x128xf32> to vector<2x256x128xf32>
    %cst_12 = arith.constant dense<0.000000e+00> : vector<2x128xf32>
    %17 = vector.multi_reduction <add>, %16, %cst_12 [1] : vector<2x256x128xf32> to vector<2x128xf32>
    %cst_13 = arith.constant 2.560000e+02 : f32
    %18 = vector.broadcast %cst_13 : f32 to vector<2x128xf32>
    %19 = arith.divf %17, %18 : vector<2x128xf32>
    %20 = arith.truncf %19 : vector<2x128xf32> to vector<2x128xbf16>
    %c0_14 = arith.constant 0 : index
    %c0_15 = arith.constant 0 : index
    %21 = vector.load %arg5[%c0_14, %c0_15] : memref<128x32xbf16, #tpu.memory_space<vmem>>, vector<128x32xbf16>
    %cst_16 = arith.constant dense<0.000000e+00> : vector<2x32xf32>
    %22 = tpu.matmul %20, %21, %cst_16 {dimension_numbers = #tpu.dot_dimension_numbers<[1], [0], [0], [1], [0, 0, 1, 1], [], []>} : vector<2x128xbf16>, vector<128x32xbf16>, vector<2x32xf32> -> vector<2x32xf32>
    %c0_17 = arith.constant 0 : index
    %c0_18 = arith.constant 0 : index
    %23 = vector.load %arg6[%c0_17, %c0_18] : memref<1x32xf32, #tpu.memory_space<vmem>>, vector<1x32xf32>
    %24 = vector.broadcast %23 : vector<1x32xf32> to vector<2x32xf32>
    %25 = arith.addf %22, %24 : vector<2x32xf32>
    %26 = vector.extract_strided_slice %19 {offsets = [0, 0], sizes = [2, 64], strides = [1, 1]} : vector<2x128xf32> to vector<2x64xf32>
    %27 = tpu.concatenate %25, %26 in 1 : vector<2x32xf32>, vector<2x64xf32> -> vector<2x96xf32>
    %c0_19 = arith.constant 0 : index
    %c0_20 = arith.constant 0 : index
    %28 = vector.load %arg7[%c0_19, %c0_20] : memref<2x96xf32, #tpu.memory_space<vmem>>, vector<2x96xf32>
    tpu.vector_store %arg7[%c0_19, %c0_20], %27 {strides = array<i32>} : memref<2x96xf32, #tpu.memory_space<vmem>>, vector<2x96xf32>,
    return
  }
}

</mosaic_0001>

<bundles_post_ra>
// kernel: sif_net_forward.2
= control target key start
LH: loop header
LB: loop body
LE: loop exit
PB: predicated region body
PF: predicated region fallthrough
CT: control target
= control target key end

     0   :  { %s3975_s0 = inlined_call_operand.vmem [shape: bf16[32,32], index: 0, kind: input, shape index: {}]   ;;  %s3976_s1 = inlined_call_operand.vmem [shape: f32[1,32], index: 1, kind: input, shape index: {}]   ;;  %s3977_s2 = inlined_call_operand.vmem [shape: bf16[32,128], index: 2, kind: input, shape index: {}]   ;;  %s3978_s3 = inlined_call_operand.vmem [shape: f32[1,128], index: 3, kind: input, shape index: {}]   ;;  %s3979_s4 = inlined_call_operand.vmem [shape: bf16[128,32], index: 4, kind: input, shape index: {}]   ;;  %s3980_s5 = inlined_call_operand.vmem [shape: f32[1,32], index: 5, kind: input, shape index: {}]   ;;  %s3981_s6 = inlined_call_operand.vmem [shape: bf16[512,27], index: 6, kind: input, shape index: {}]   ;;  %s3982_s7 = inlined_call_operand.<no memory space> [shape: bf16[], index: 7, kind: input, shape index: {}]   ;;  %s3983_s8 = inlined_call_operand.vmem [shape: f32[2,96], index: 8, kind: output, shape index: {}]  }
   0x1   :  { %v13_v0 = vstv %s3982_s7 }
   0x2   :  { %v3356_v1 = vunpack.i.l.bf16 %v13_v0 }
   0x3   :  { %v3261_v2 = vld [vmem:[%s3975_s0] sm:$0xff]   ;;  %v44_v3 = vlaneseq  ;;  %v3262_v4 = vld [vmem:[%s3975_s0 + $0x8] sm:$0xff]   ;;  %v2854_v8 = vld [vmem:[%s3981_s6 + $0x10] sm:$0xff]   ;;  %v3305_v22 = vmov 0.0   ;;  %vm1686_vm1 = vcmask 261120   ;;  %vm3306_vm2 = vmmov 0  }
   0x4   :  { %3102 = vmatprep.subr.bf16.mxu0 %v3261_v2  ;;  %v41_v5 = vld [vmem:[%s3981_s6] sm:$0xff]   ;;  %v2852_v7 = vld [vmem:[%s3981_s6 + $0x8] sm:$0xff]   ;;  %v2856_v13 = vld [vmem:[%s3981_s6 + $0x18] sm:$0xff]   ;;  %v129_v14 = vunpack.c.l.bf16 %v2854_v8  ;;  %v151_v15 = vunpack.c.h.bf16 %v2854_v8  ;;  %vm2746_vm3 = vcmask 1041409   ;;  %vm2845_vm4 = vcmask 779264  }
   0x5   :  { %v3367_v6 = vand.u32 127, %v44_v3  ;;  %3103 = vmatpush3.bf16.msra.mxu0 %v3261_v2  ;;  %v42_v9 = vunpack.c.l.bf16 %v41_v5  ;;  %v63_v10 = vunpack.c.h.bf16 %v41_v5  ;;  %v85_v11 = vunpack.c.l.bf16 %v2852_v7  ;;  %v2858_v21 = vld [vmem:[%s3981_s6 + $0x20] sm:$0xff]   ;;  %v2860_v27 = vld [vmem:[%s3981_s6 + $0x28] sm:$0xff]   ;;  %v2862_v32 = vld [vmem:[%s3981_s6 + $0x30] sm:$0xff]  }
   0x6   :  { %v107_v12 = vunpack.c.h.bf16 %v2852_v7  ;;  %3104 = vmatprep.subr.bf16.mxu0 %v3262_v4  ;;  %v173_v16 = vunpack.c.l.bf16 %v2856_v13  ;;  %v195_v31 = vunpack.c.h.bf16 %v2856_v13  ;;  %v217_v36 = vunpack.c.l.bf16 %v2858_v21  ;;  %v2864_v45 = vld [vmem:[%s3981_s6 + $0x38] sm:$0xff]   ;;  %v2866_v50 = vld [vmem:[%s3981_s6 + $0x40] sm:$0xff]   ;;  %v2868_v51 = vld [vmem:[%s3981_s6 + $0x48] sm:$0xff]  }
   0x7   :  { %vm47_vm0 = vcmp.lt.s32.totalorder %v3367_v6, 27  ;;  %v239_v38 = vunpack.c.h.bf16 %v2858_v21  ;;  %v261_v39 = vunpack.c.l.bf16 %v2860_v27  ;;  %v283_v40 = vunpack.c.h.bf16 %v2860_v27  ;;  %v2870_v56 = vld [vmem:[%s3981_s6 + $0x50] sm:$0xff]   ;;  %v2872_v2 = vld [vmem:[%s3981_s6 + $0x58] sm:$0xff]   ;;  %v2874_v3 = vld [vmem:[%s3981_s6 + $0x60] sm:$0xff]  }
   0x8   :  { %v48_v17 = vsel %vm47_vm0, %v42_v9, %v3356_v1  ;;  %v69_v18 = vsel %vm47_vm0, %v63_v10, %v3356_v1  ;;  %v91_v19 = vsel %vm47_vm0, %v85_v11, %v3356_v1  ;;  %v113_v20 = vsel %vm47_vm0, %v107_v12, %v3356_v1  ;;  %v2876_v10 = vld [vmem:[%s3981_s6 + $0x68] sm:$0xff]  }
   0x9   :  { %v49_v23 = vpack.c.bf16 %v3305_v22, %v48_v17  ;;  %v71_v24 = vpack.c.bf16 %v3305_v22, %v69_v18  ;;  %v93_v25 = vpack.c.bf16 %v3305_v22, %v91_v19  ;;  %v115_v26 = vpack.c.bf16 %v3305_v22, %v113_v20  ;;  %3105 = vmatpush3.bf16.msra.mxu0 %v3262_v4 }
   0xa   :  { %v135_v28 = vsel %vm47_vm0, %v129_v14, %v3356_v1  ;;  %v157_v29 = vsel %vm47_vm0, %v151_v15, %v3356_v1  ;;  %v179_v30 = vsel %vm47_vm0, %v173_v16, %v3356_v1  ;;  %3238 = vmatprep.subr.bf16.mxu0 %v3305_v22  ;;  %v201_v37 = vsel %vm47_vm0, %v195_v31, %v3356_v1  ;;  %v2880_v31 = vld [vmem:[%s3981_s6 + $0x78] sm:$0xff]  }
   0xb   :  { %51 = vst [vmem:[#allocation7] sm:$0xf] %v49_v23  ;;  %73 = vst [vmem:[#allocation7 + $0x4] sm:$0xf] %v71_v24  ;;  %v137_v33 = vpack.c.bf16 %v3305_v22, %v135_v28  ;;  %v159_v34 = vpack.c.bf16 %v3305_v22, %v157_v29  ;;  %v181_v35 = vpack.c.bf16 %v3305_v22, %v179_v30  ;;  %v305_v43 = vunpack.c.l.bf16 %v2862_v32 }
   0xc   :  { %95 = vst [vmem:[#allocation7 + $0x8] sm:$0xf] %v93_v25  ;;  %117 = vst [vmem:[#allocation7 + $0xc] sm:$0xf] %v115_v26  ;;  %v203_v41 = vpack.c.bf16 %v3305_v22, %v201_v37  ;;  %v223_v42 = vsel %vm47_vm0, %v217_v36, %v3356_v1  ;;  %v327_v44 = vunpack.c.h.bf16 %v2862_v32  ;;  %v245_v47 = vsel %vm47_vm0, %v239_v38, %v3356_v1  ;;  %v2878_v26 = vld [vmem:[%s3981_s6 + $0x70] sm:$0xff]   ;;  %v2882_v36 = vld [vmem:[%s3981_s6 + $0x80] sm:$0xff]  }
   0xd   :  { %139 = vst [vmem:[#allocation7 + $0x10] sm:$0xf] %v137_v33  ;;  %161 = vst [vmem:[#allocation7 + $0x14] sm:$0xf] %v159_v34  ;;  %v225_v46 = vpack.c.bf16 %v3305_v22, %v223_v42  ;;  %v267_v48 = vsel %vm47_vm0, %v261_v39, %v3356_v1  ;;  %v289_v49 = vsel %vm47_vm0, %v283_v40, %v3356_v1  ;;  %v349_v59 = vunpack.c.l.bf16 %v2864_v45 }
   0xe   :  { %183 = vst [vmem:[#allocation7 + $0x18] sm:$0xf] %v181_v35  ;;  %205 = vst [vmem:[#allocation7 + $0x1c] sm:$0xf] %v203_v41  ;;  %v247_v52 = vpack.c.bf16 %v3305_v22, %v245_v47  ;;  %v269_v53 = vpack.c.bf16 %v3305_v22, %v267_v48  ;;  %v291_v54 = vpack.c.bf16 %v3305_v22, %v289_v49  ;;  %v371_v60 = vunpack.c.h.bf16 %v2864_v45  ;;  %v3522_v41 = vld [vmem:[%s3981_s6 + $0x88] sm:$0xff]  }
   0xf   :  { %v311_v55 = vsel %vm47_vm0, %v305_v43, %v3356_v1  ;;  %227 = vst [vmem:[#allocation7 + $0x20] sm:$0xf] %v225_v46  ;;  %v333_v58 = vsel %vm47_vm0, %v327_v44, %v3356_v1  ;;  %v393_v62 = vunpack.c.l.bf16 %v2866_v50  ;;  %v415_v63 = vunpack.c.h.bf16 %v2866_v50 }
  0x10   :  { %v313_v57 = vpack.c.bf16 %v3305_v22, %v311_v55  ;;  %249 = vst [vmem:[#allocation7 + $0x24] sm:$0xf] %v247_v52  ;;  %271 = vst [vmem:[#allocation7 + $0x28] sm:$0xf] %v269_v53  ;;  %v335_v61 = vpack.c.bf16 %v3305_v22, %v333_v58  ;;  %v437_v0 = vunpack.c.l.bf16 %v2868_v51  ;;  %v355_v5 = vsel %vm47_vm0, %v349_v59, %v3356_v1 }
  0x11   :  { %293 = vst [vmem:[#allocation7 + $0x2c] sm:$0xf] %v291_v54  ;;  %v377_v7 = vsel %vm47_vm0, %v371_v60, %v3356_v1  ;;  %v459_v8 = vunpack.c.h.bf16 %v2868_v51  ;;  %v481_v9 = vunpack.c.l.bf16 %v2870_v56  ;;  %v357_v12 = vpack.c.bf16 %v3305_v22, %v355_v5 }
  0x12   :  { %v3263_v4 = vld [vmem:[#allocation7] sm:$0xff]   ;;  %315 = vst [vmem:[#allocation7 + $0x30] sm:$0xf] %v313_v57  ;;  %337 = vst [vmem:[#allocation7 + $0x34] sm:$0xf] %v335_v61  ;;  %v379_v13 = vpack.c.bf16 %v3305_v22, %v377_v7  ;;  %v399_v14 = vsel %vm47_vm0, %v393_v62, %v3356_v1  ;;  %v421_v15 = vsel %vm47_vm0, %v415_v63, %v3356_v1  ;;  %v503_v25 = vunpack.c.h.bf16 %v2870_v56  ;;  %v2886_v56 = vld [vmem:[%s3981_s6 + $0x90] sm:$0xff]  }
  0x13   :  { %v3264_v11 = vld [vmem:[#allocation7 + $0x8] sm:$0xff]   ;;  %3106 = vmatprep.mubr.msk.bf16.mxu0 %vm1686_vm1, %v3263_v4  ;;  %v401_v17 = vpack.c.bf16 %v3305_v22, %v399_v14  ;;  %v423_v18 = vpack.c.bf16 %v3305_v22, %v421_v15  ;;  %v443_v19 = vsel %vm47_vm0, %v437_v0, %v3356_v1  ;;  %v465_v20 = vsel %vm47_vm0, %v459_v8, %v3356_v1  ;;  %v2888_v61 = vld [vmem:[%s3981_s6 + $0x98] sm:$0xff]  }
  0x14   :  { %v3265_v16 = vld [vmem:[#allocation7 + $0x10] sm:$0xff]   ;;  %3107 = vmatmul.mubr.msk.bf16.vlgmr.msra.gmra.mrb[0].mxu0 %vm1686_vm1, %v3264_v11  ;;  %359 = vst [vmem:[#allocation7 + $0x38] sm:$0xf] %v357_v12  ;;  %381 = vst [vmem:[#allocation7 + $0x3c] sm:$0xf] %v379_v13  ;;  %v445_v21 = vpack.c.bf16 %v3305_v22, %v443_v19  ;;  %v467_v23 = vpack.c.bf16 %v3305_v22, %v465_v20  ;;  %v487_v24 = vsel %vm47_vm0, %v481_v9, %v3356_v1  ;;  %v2892_v9 = vld [vmem:[%s3981_s6 + $0xa8] sm:$0xff]  }
  0x15   :  { %3110 = vmatprep.mubr.msk.bf16.mxu0 %vm1686_vm1, %v3265_v16  ;;  %403 = vst [vmem:[#allocation7 + $0x40] sm:$0xf] %v401_v17  ;;  %425 = vst [vmem:[#allocation7 + $0x44] sm:$0xf] %v423_v18  ;;  %v489_v27 = vpack.c.bf16 %v3305_v22, %v487_v24  ;;  %v525_v28 = vunpack.c.l.bf16 %v2872_v2  ;;  %v547_v29 = vunpack.c.h.bf16 %v2872_v2  ;;  %v569_v30 = vunpack.c.l.bf16 %v2874_v3  ;;  %v3266_v42 = vld [vmem:[#allocation7 + $0x18] sm:$0xff]   ;;  %v2894_v24 = vld [vmem:[%s3981_s6 + $0xb0] sm:$0xff]  }
  0x16   :  { %447 = vst [vmem:[#allocation7 + $0x48] sm:$0xf] %v445_v21  ;;  %469 = vst [vmem:[#allocation7 + $0x4c] sm:$0xf] %v467_v23  ;;  %v509_v32 = vsel %vm47_vm0, %v503_v25, %v3356_v1  ;;  %v591_v33 = vunpack.c.h.bf16 %v2874_v3  ;;  %v613_v34 = vunpack.c.l.bf16 %v2876_v10  ;;  %v635_v35 = vunpack.c.h.bf16 %v2876_v10  ;;  %v2890_v3 = vld [vmem:[%s3981_s6 + $0xa0] sm:$0xff]  }
  0x17   :  { %491 = vst [vmem:[#allocation7 + $0x50] sm:$0xf] %v489_v27  ;;  %v511_v37 = vpack.c.bf16 %v3305_v22, %v509_v32  ;;  %v531_v38 = vsel %vm47_vm0, %v525_v28, %v3356_v1  ;;  %v553_v39 = vsel %vm47_vm0, %v547_v29, %v3356_v1  ;;  %v575_v40 = vsel %vm47_vm0, %v569_v30, %v3356_v1  ;;  %v3267_v47 = vld [vmem:[#allocation7 + $0x20] sm:$0xff]  }
  0x18   :  { %v533_v43 = vpack.c.bf16 %v3305_v22, %v531_v38  ;;  %v555_v44 = vpack.c.bf16 %v3305_v22, %v553_v39  ;;  %v577_v45 = vpack.c.bf16 %v3305_v22, %v575_v40  ;;  %v597_v46 = vsel %vm47_vm0, %v591_v33, %v3356_v1  ;;  %v3268_v18 = vld [vmem:[#allocation7 + $0x28] sm:$0xff]   ;;  %v2898_v39 = vld [vmem:[%s3981_s6 + $0xc0] sm:$0xff]  }
  0x19   :  { %513 = vst [vmem:[#allocation7 + $0x54] sm:$0xf] %v511_v37  ;;  %v599_v48 = vpack.c.bf16 %v3305_v22, %v597_v46  ;;  %v619_v49 = vsel %vm47_vm0, %v613_v34, %v3356_v1  ;;  %v641_v50 = vsel %vm47_vm0, %v635_v35, %v3356_v1  ;;  %v657_v51 = vunpack.c.l.bf16 %v2878_v26  ;;  %v3269_v25 = vld [vmem:[#allocation7 + $0x30] sm:$0xff]   ;;  %v2896_v34 = vld [vmem:[%s3981_s6 + $0xb8] sm:$0xff]  }
  0x1a   :  { %535 = vst [vmem:[#allocation7 + $0x58] sm:$0xf] %v533_v43  ;;  %557 = vst [vmem:[#allocation7 + $0x5c] sm:$0xf] %v555_v44  ;;  %v621_v52 = vpack.c.bf16 %v3305_v22, %v619_v49  ;;  %v643_v53 = vpack.c.bf16 %v3305_v22, %v641_v50  ;;  %v679_v54 = vunpack.c.h.bf16 %v2878_v26  ;;  %v701_v55 = vunpack.c.l.bf16 %v2880_v31  ;;  %v2900_v44 = vld [vmem:[%s3981_s6 + $0xc8] sm:$0xff]  }
  0x1b   :  { %579 = vst [vmem:[#allocation7 + $0x60] sm:$0xf] %v577_v45  ;;  %601 = vst [vmem:[#allocation7 + $0x64] sm:$0xf] %v599_v48  ;;  %v663_v57 = vsel %vm47_vm0, %v657_v51, %v3356_v1  ;;  %v723_v58 = vunpack.c.h.bf16 %v2880_v31  ;;  %v745_v59 = vunpack.c.l.bf16 %v2882_v36  ;;  %v767_v60 = vunpack.c.h.bf16 %v2882_v36 }
  0x1c   :  { %3111 = vmatmul.mubr.msk.bf16.gmra.mrb[4].mxu0 %vm1686_vm1, %v3266_v42  ;;  %623 = vst [vmem:[#allocation7 + $0x68] sm:$0xf] %v621_v52  ;;  %645 = vst [vmem:[#allocation7 + $0x6c] sm:$0xf] %v643_v53  ;;  %v665_v62 = vpack.c.bf16 %v3305_v22, %v663_v57  ;;  %v685_v63 = vsel %vm47_vm0, %v679_v54, %v3356_v1  ;;  %v707_v0 = vsel %vm47_vm0, %v701_v55, %v3356_v1  ;;  %v2902_v57 = vld [vmem:[%s3981_s6 + $0xd0] sm:$0xff]  }
  0x1d   :  { %v789_v2 = vunpack.c.l.bf16 %v3522_v41  ;;  %3114 = vmatprep.mubr.msk.bf16.mxu0 %vm1686_vm1, %v3267_v47  ;;  %v687_v4 = vpack.c.bf16 %v3305_v22, %v685_v63  ;;  %v709_v5 = vpack.c.bf16 %v3305_v22, %v707_v0  ;;  %v729_v7 = vsel %vm47_vm0, %v723_v58, %v3356_v1  ;;  %v3270_v58 = vld [vmem:[#allocation7 + $0x38] sm:$0xff]   ;;  %v3271_v63 = vld [vmem:[#allocation7 + $0x40] sm:$0xff]  }
  0x1e   :  { %v751_v8 = vsel %vm47_vm0, %v745_v59, %v3356_v1  ;;  %667 = vst [vmem:[#allocation7 + $0x70] sm:$0xf] %v665_v62  ;;  %v731_v10 = vpack.c.bf16 %v3305_v22, %v729_v7  ;;  %v773_v12 = vsel %vm47_vm0, %v767_v60, %v3356_v1  ;;  %v811_v16 = vunpack.c.h.bf16 %v3522_v41  ;;  %v2906_v7 = vld [vmem:[%s3981_s6 + $0xe0] sm:$0xff]  }
  0x1f   :  { %v753_v11 = vpack.c.bf16 %v3305_v22, %v751_v8  ;;  %v795_v13 = vsel %vm47_vm0, %v789_v2, %v3356_v1  ;;  %689 = vst [vmem:[#allocation7 + $0x74] sm:$0xf] %v687_v4  ;;  %711 = vst [vmem:[#allocation7 + $0x78] sm:$0xf] %v709_v5  ;;  %v775_v14 = vpack.c.bf16 %v3305_v22, %v773_v12  ;;  %v833_v17 = vunpack.c.l.bf16 %v2886_v56  ;;  %v2904_v5 = vld [vmem:[%s3981_s6 + $0xd8] sm:$0xff]   ;;  %v2908_v12 = vld [vmem:[%s3981_s6 + $0xe8] sm:$0xff]  }
  0x20   :  { %v797_v15 = vpack.c.bf16 %v3305_v22, %v795_v13  ;;  %733 = vst [vmem:[#allocation7 + $0x7c] sm:$0xf] %v731_v10  ;;  %v855_v19 = vunpack.c.h.bf16 %v2886_v56  ;;  %v877_v20 = vunpack.c.l.bf16 %v2888_v61  ;;  %v899_v21 = vunpack.c.h.bf16 %v2888_v61 }
  0x21   :  { %755 = vst [vmem:[#allocation7 + $0x80] sm:$0xf] %v753_v11  ;;  %v921_v23 = vunpack.c.l.bf16 %v2890_v3  ;;  %777 = vst [vmem:[#allocation7 + $0x84] sm:$0xf] %v775_v14  ;;  %v817_v26 = vsel %vm47_vm0, %v811_v16, %v3356_v1  ;;  %v839_v27 = vsel %vm47_vm0, %v833_v17, %v3356_v1  ;;  %v943_v28 = vunpack.c.h.bf16 %v2890_v3 }
  0x22   :  { %799 = vst [vmem:[#allocation7 + $0x88] sm:$0xf] %v797_v15  ;;  %v965_v29 = vunpack.c.l.bf16 %v2892_v9  ;;  %v819_v30 = vpack.c.bf16 %v3305_v22, %v817_v26  ;;  %v841_v31 = vpack.c.bf16 %v3305_v22, %v839_v27  ;;  %v861_v32 = vsel %vm47_vm0, %v855_v19, %v3356_v1 }
  0x23   :  { %v883_v33 = vsel %vm47_vm0, %v877_v20, %v3356_v1  ;;  %v863_v35 = vpack.c.bf16 %v3305_v22, %v861_v32  ;;  %v905_v37 = vsel %vm47_vm0, %v899_v21, %v3356_v1  ;;  %v927_v38 = vsel %vm47_vm0, %v921_v23, %v3356_v1 }
  0x24   :  { %v885_v36 = vpack.c.bf16 %v3305_v22, %v883_v33  ;;  %3115 = vmatmul.mubr.msk.bf16.gmra.mrb[8].mxu0 %vm1686_vm1, %v3268_v18  ;;  %821 = vst [vmem:[#allocation7 + $0x8c] sm:$0xf] %v819_v30  ;;  %843 = vst [vmem:[#allocation7 + $0x90] sm:$0xf] %v841_v31  ;;  %v907_v40 = vpack.c.bf16 %v3305_v22, %v905_v37  ;;  %v929_v41 = vpack.c.bf16 %v3305_v22, %v927_v38  ;;  %v2910_v30 = vld [vmem:[%s3981_s6 + $0xf0] sm:$0xff]  }
  0x25   :  { %v949_v42 = vsel %vm47_vm0, %v943_v28, %v3356_v1  ;;  %v971_v43 = vsel %vm47_vm0, %v965_v29, %v3356_v1  ;;  %3118 = vmatprep.mubr.msk.bf16.mxu0 %vm1686_vm1, %v3269_v25  ;;  %865 = vst [vmem:[#allocation7 + $0x94] sm:$0xf] %v863_v35  ;;  %v987_v47 = vunpack.c.h.bf16 %v2892_v9  ;;  %v1009_v48 = vunpack.c.l.bf16 %v2894_v24  ;;  %v2912_v35 = vld [vmem:[%s3981_s6 + $0xf8] sm:$0xff]  }
  0x26   :  { %887 = vst [vmem:[#allocation7 + $0x98] sm:$0xf] %v885_v36  ;;  %v951_v45 = vpack.c.bf16 %v3305_v22, %v949_v42  ;;  %v973_v46 = vpack.c.bf16 %v3305_v22, %v971_v43  ;;  %909 = vst [vmem:[#allocation7 + $0x9c] sm:$0xf] %v907_v40  ;;  %v1031_v49 = vunpack.c.h.bf16 %v2894_v24  ;;  %v1053_v50 = vunpack.c.l.bf16 %v2896_v34  ;;  %v3272_v36 = vld [vmem:[#allocation7 + $0x48] sm:$0xff]  }
  0x27   :  { %931 = vst [vmem:[#allocation7 + $0xa0] sm:$0xf] %v929_v41  ;;  %v1075_v51 = vunpack.c.h.bf16 %v2896_v34  ;;  %v1097_v52 = vunpack.c.l.bf16 %v2898_v39  ;;  %v993_v53 = vsel %vm47_vm0, %v987_v47, %v3356_v1  ;;  %v1015_v54 = vsel %vm47_vm0, %v1009_v48, %v3356_v1  ;;  %v3273_v41 = vld [vmem:[#allocation7 + $0x50] sm:$0xff]  }
  0x28   :  { %953 = vst [vmem:[#allocation7 + $0xa4] sm:$0xf] %v951_v45  ;;  %975 = vst [vmem:[#allocation7 + $0xa8] sm:$0xf] %v973_v46  ;;  %v1119_v55 = vunpack.c.h.bf16 %v2898_v39  ;;  %v1141_v56 = vunpack.c.l.bf16 %v2900_v44  ;;  %v995_v59 = vpack.c.bf16 %v3305_v22, %v993_v53  ;;  %v1017_v60 = vpack.c.bf16 %v3305_v22, %v1015_v54  ;;  %v3279_v6 = vld [vmem:[#allocation7 + $0x80] sm:$0xff]  }
  0x29   :  { %v1037_v61 = vsel %vm47_vm0, %v1031_v49, %v3356_v1  ;;  %v1059_v62 = vsel %vm47_vm0, %v1053_v50, %v3356_v1  ;;  %v1081_v3 = vsel %vm47_vm0, %v1075_v51, %v3356_v1  ;;  %v1103_v4 = vsel %vm47_vm0, %v1097_v52, %v3356_v1 }
  0x2a   :  { %v1039_v0 = vpack.c.bf16 %v3305_v22, %v1037_v61  ;;  %v1061_v2 = vpack.c.bf16 %v3305_v22, %v1059_v62  ;;  %997 = vst [vmem:[#allocation7 + $0xac] sm:$0xf] %v995_v59  ;;  %1019 = vst [vmem:[#allocation7 + $0xb0] sm:$0xf] %v1017_v60  ;;  %v1083_v8 = vpack.c.bf16 %v3305_v22, %v1081_v3  ;;  %v1163_v15 = vunpack.c.h.bf16 %v2900_v44  ;;  %v3274_v59 = vld [vmem:[#allocation7 + $0x58] sm:$0xff]   ;;  %v3275_v60 = vld [vmem:[#allocation7 + $0x60] sm:$0xff]  }
  0x2b   :  { %v1105_v9 = vpack.c.bf16 %v3305_v22, %v1103_v4  ;;  %v1125_v10 = vsel %vm47_vm0, %v1119_v55, %v3356_v1  ;;  %v1147_v11 = vsel %vm47_vm0, %v1141_v56, %v3356_v1  ;;  %v1185_v16 = vunpack.c.l.bf16 %v2902_v57  ;;  %v3276_v61 = vld [vmem:[#allocation7 + $0x68] sm:$0xff]   ;;  %v3277_v62 = vld [vmem:[#allocation7 + $0x70] sm:$0xff]  }
  0x2c   :  { %1041 = vst [vmem:[#allocation7 + $0xb4] sm:$0xf] %v1039_v0  ;;  %1063 = vst [vmem:[#allocation7 + $0xb8] sm:$0xf] %v1061_v2  ;;  %v1127_v13 = vpack.c.bf16 %v3305_v22, %v1125_v10  ;;  %v1149_v14 = vpack.c.bf16 %v3305_v22, %v1147_v11  ;;  %3119 = vmatmul.mubr.msk.bf16.gmra.mrb[12].mxu0 %vm1686_vm1, %v3270_v58  ;;  %v1207_v17 = vunpack.c.h.bf16 %v2902_v57  ;;  %v1229_v18 = vunpack.c.l.bf16 %v2904_v5  ;;  %v3281_v0 = vld [vmem:[#allocation7 + $0x90] sm:$0xff]   ;;  %v3296_v10 = vld [vmem:[%s3977_s2 + $0x8] sm:$0xff]  }
  0x2d   :  { %1085 = vst [vmem:[#allocation7 + $0xbc] sm:$0xf] %v1083_v8  ;;  %1107 = vst [vmem:[#allocation7 + $0xc0] sm:$0xf] %v1105_v9  ;;  %v1251_v19 = vunpack.c.h.bf16 %v2904_v5  ;;  %v1273_v20 = vunpack.c.l.bf16 %v2906_v7  ;;  %3122 = vmatprep.mubr.msk.bf16.mxu0 %vm1686_vm1, %v3271_v63  ;;  %v1169_v21 = vsel %vm47_vm0, %v1163_v15, %v3356_v1  ;;  %v1191_v23 = vsel %vm47_vm0, %v1185_v16, %v3356_v1  ;;  %v3280_v63 = vld [vmem:[#allocation7 + $0x88] sm:$0xff]   ;;  %v3282_v2 = vld [vmem:[#allocation7 + $0x98] sm:$0xff]  }
  0x2e   :  { %1129 = vst [vmem:[#allocation7 + $0xc4] sm:$0xf] %v1127_v13  ;;  %1151 = vst [vmem:[#allocation7 + $0xc8] sm:$0xf] %v1149_v14  ;;  %v1295_v24 = vunpack.c.h.bf16 %v2906_v7  ;;  %v1317_v25 = vunpack.c.l.bf16 %v2908_v12  ;;  %v1171_v26 = vpack.c.bf16 %v3305_v22, %v1169_v21  ;;  %v1193_v27 = vpack.c.bf16 %v3305_v22, %v1191_v23  ;;  %v3295_v8 = vld [vmem:[%s3977_s2] sm:$0xff]  }
  0x2f   :  { %v1213_v28 = vsel %vm47_vm0, %v1207_v17, %v3356_v1  ;;  %v1235_v29 = vsel %vm47_vm0, %v1229_v18, %v3356_v1  ;;  %v1257_v33 = vsel %vm47_vm0, %v1251_v19, %v3356_v1  ;;  %v1279_v34 = vsel %vm47_vm0, %v1273_v20, %v3356_v1  ;;  %v3283_v3 = vld [vmem:[#allocation7 + $0xa0] sm:$0xff]   ;;  %3170 = vmatprep.subr.bf16.mxu1 %v3295_v8 }
  0x30   :  { %v1215_v31 = vpack.c.bf16 %v3305_v22, %v1213_v28  ;;  %v1237_v32 = vpack.c.bf16 %v3305_v22, %v1235_v29  ;;  %1173 = vst [vmem:[#allocation7 + $0xcc] sm:$0xf] %v1171_v26  ;;  %1195 = vst [vmem:[#allocation7 + $0xd0] sm:$0xf] %v1193_v27  ;;  %v1259_v37 = vpack.c.bf16 %v3305_v22, %v1257_v33  ;;  %v1339_v44 = vunpack.c.h.bf16 %v2908_v12  ;;  %v3765_v18 = vld [vmem:[%s3976_s1] ss:$0 sm:$0xff] }
  0x31   :  { %v1281_v38 = vpack.c.bf16 %v3305_v22, %v1279_v34  ;;  %v1301_v39 = vsel %vm47_vm0, %v1295_v24, %v3356_v1  ;;  %v1323_v40 = vsel %vm47_vm0, %v1317_v25, %v3356_v1  ;;  %v1361_v45 = vunpack.c.l.bf16 %v2910_v30  ;;  %v3284_v4 = vld [vmem:[#allocation7 + $0xa8] sm:$0xff]   ;;  %3171 = vmatpush3.bf16.msra.mxu1 %v3295_v8 }
  0x32   :  { %1217 = vst [vmem:[#allocation7 + $0xd4] sm:$0xf] %v1215_v31  ;;  %1239 = vst [vmem:[#allocation7 + $0xd8] sm:$0xf] %v1237_v32  ;;  %v1303_v42 = vpack.c.bf16 %v3305_v22, %v1301_v39  ;;  %v1325_v43 = vpack.c.bf16 %v3305_v22, %v1323_v40  ;;  %v1383_v46 = vunpack.c.h.bf16 %v2910_v30  ;;  %v1405_v47 = vunpack.c.l.bf16 %v2912_v35  ;;  %3172 = vmatprep.subr.bf16.mxu1 %v3296_v10 }
  0x33   :  { %1261 = vst [vmem:[#allocation7 + $0xdc] sm:$0xf] %v1259_v37  ;;  %1283 = vst [vmem:[#allocation7 + $0xe0] sm:$0xf] %v1281_v38  ;;  %v1427_v48 = vunpack.c.h.bf16 %v2912_v35  ;;  %v1345_v49 = vsel %vm47_vm0, %v1339_v44, %v3356_v1  ;;  %v1367_v50 = vsel %vm47_vm0, %v1361_v45, %v3356_v1  ;;  %v3285_v5 = vld [vmem:[#allocation7 + $0xb0] sm:$0xff]  }
  0x34   :  { %1305 = vst [vmem:[#allocation7 + $0xe4] sm:$0xf] %v1303_v42  ;;  %1327 = vst [vmem:[#allocation7 + $0xe8] sm:$0xf] %v1325_v43  ;;  %3123 = vmatmul.mubr.msk.bf16.gmra.mrb[16].mxu0 %vm1686_vm1, %v3272_v36  ;;  %v1347_v51 = vpack.c.bf16 %v3305_v22, %v1345_v49  ;;  %v1369_v52 = vpack.c.bf16 %v3305_v22, %v1367_v50  ;;  %v1389_v53 = vsel %vm47_vm0, %v1383_v46, %v3356_v1  ;;  %v3286_v7 = vld [vmem:[#allocation7 + $0xb8] sm:$0xff]  }
  0x35   :  { %v1411_v54 = vsel %vm47_vm0, %v1405_v47, %v3356_v1  ;;  %3126 = vmatprep.mubr.msk.bf16.mxu0 %vm1686_vm1, %v3273_v41  ;;  %v1391_v55 = vpack.c.bf16 %v3305_v22, %v1389_v53  ;;  %v1433_v57 = vsel %vm47_vm0, %v1427_v48, %v3356_v1  ;;  %v3278_v1 = vld [vmem:[#allocation7 + $0x78] sm:$0xff]   ;;  %v3287_v9 = vld [vmem:[#allocation7 + $0xc0] sm:$0xff]   ;;  %3173 = vmatpush3.bf16.msra.mxu1 %v3296_v10 }
  0x36   :  { %v1413_v56 = vpack.c.bf16 %v3305_v22, %v1411_v54  ;;  %1349 = vst [vmem:[#allocation7 + $0xec] sm:$0xf] %v1347_v51  ;;  %1371 = vst [vmem:[#allocation7 + $0xf0] sm:$0xf] %v1369_v52  ;;  %v1435_v58 = vpack.c.bf16 %v3305_v22, %v1433_v57 }
  0x37   :  { %1393 = vst [vmem:[#allocation7 + $0xf4] sm:$0xf] %v1391_v55  ;;  %v3288_v11 = vld [vmem:[#allocation7 + $0xc8] sm:$0xff]  }
  0x38   :  { %1415 = vst [vmem:[#allocation7 + $0xf8] sm:$0xf] %v1413_v56  ;;  %1437 = vst [vmem:[#allocation7 + $0xfc] sm:$0xf] %v1435_v58 }
  0x39   :  { %v3289_v12 = vld [vmem:[#allocation7 + $0xd0] sm:$0xff]  }
  0x3a   :  { %v3290_v13 = vld [vmem:[#allocation7 + $0xd8] sm:$0xff]  }
  0x3b   :  { %v3291_v14 = vld [vmem:[#allocation7 + $0xe0] sm:$0xff]  }
  0x3c   :  { %3127 = vmatmul.mubr.msk.bf16.gmra.mrb[20].mxu0 %vm1686_vm1, %v3274_v59 }
  0x3d   :  { %3130 = vmatprep.mubr.msk.bf16.mxu0 %vm1686_vm1, %v3275_v60  ;;  %v3292_v15 = vld [vmem:[#allocation7 + $0xe8] sm:$0xff]  }
  0x3e   :  { %v3293_v16 = vld [vmem:[#allocation7 + $0xf0] sm:$0xff]  }
  0x3f   :  { %v3294_v17 = vld [vmem:[#allocation7 + $0xf8] sm:$0xff]  }
  0x44   :  { %3131 = vmatmul.mubr.msk.bf16.gmra.mrb[24].mxu0 %vm1686_vm1, %v3276_v61 }
  0x45   :  { %3134 = vmatprep.mubr.msk.bf16.mxu0 %vm1686_vm1, %v3277_v62 }
  0x4c   :  { %3135 = vmatmul.mubr.msk.bf16.gmra.mrb[28].mxu0 %vm1686_vm1, %v3278_v1 }
  0x4d   :  { %3138 = vmatprep.mubr.msk.bf16.mxu0 %vm1686_vm1, %v3279_v6 }
  0x54   :  { %3139 = vmatmul.mubr.msk.bf16.gmra.mrb[32].mxu0 %vm1686_vm1, %v3280_v63 }
  0x55   :  { %3142 = vmatprep.mubr.msk.bf16.mxu0 %vm1686_vm1, %v3281_v0 }
  0x5c   :  { %3143 = vmatmul.mubr.msk.bf16.gmra.mrb[36].mxu0 %vm1686_vm1, %v3282_v2 }
  0x5d   :  { %3146 = vmatprep.mubr.msk.bf16.mxu0 %vm1686_vm1, %v3283_v3 }
  0x64   :  { %3147 = vmatmul.mubr.msk.bf16.gmra.mrb[40].mxu0 %vm1686_vm1, %v3284_v4 }
  0x65   :  { %3150 = vmatprep.mubr.msk.bf16.mxu0 %vm1686_vm1, %v3285_v5 }
  0x6c   :  { %3151 = vmatmul.mubr.msk.bf16.gmra.mrb[44].mxu0 %vm1686_vm1, %v3286_v7 }
  0x6d   :  { %3154 = vmatprep.mubr.msk.bf16.mxu0 %vm1686_vm1, %v3287_v9 }
  0x74   :  { %3155 = vmatmul.mubr.msk.bf16.gmra.mrb[48].mxu0 %vm1686_vm1, %v3288_v11 }
  0x75   :  { %3158 = vmatprep.mubr.msk.bf16.mxu0 %vm1686_vm1, %v3289_v12 }
  0x7c   :  { %3159 = vmatmul.mubr.msk.bf16.gmra.mrb[52].mxu0 %vm1686_vm1, %v3290_v13 }
  0x7d   :  { %3162 = vmatprep.mubr.msk.bf16.mxu0 %vm1686_vm1, %v3291_v14 }
  0x84   :  { %3163 = vmatmul.mubr.msk.bf16.gmra.mrb[56].mxu0 %vm1686_vm1, %v3292_v15 }
  0x85   :  { %3166 = vmatprep.mubr.msk.bf16.mxu0 %vm1686_vm1, %v3293_v16 }
  0x8c   :  { %3167 = vmatmul.mubr.msk.bf16.gmra.mrb[60].mxu0 %vm1686_vm1, %v3294_v17 }
  0x8d   :  { %3254 = vmatprep.mubr.msk.bf16.mxu0 %vm3306_vm2, %v3305_v22 }
  0xe7   :  { %v3108_v19 = vpop.f32.mrb[0].mxu0 }
  0xe8   :  { %v1826_v20 = vadd.f32 %v3108_v19, %v3765_v18  ;;  %v1817_v21 = vpop.f32.mrb[1].mxu0 }
  0xe9   :  { %v1818_v23 = vadd.f32 %v3765_v18, %v1817_v21  ;;  %v3109_v24 = vpop.f32.mrb[2].mxu0 }
  0xea   :  { %v1829_v25 = vadd.f32 %v3109_v24, %v3765_v18  ;;  %v1820_v26 = vpop.f32.mrb[3].mxu0  ;;  %v2074_v28 = vmax.f32 %v1826_v20, 0.0 }
  0xeb   :  { %v1821_v27 = vadd.f32 %v3765_v18, %v1820_v26  ;;  %v2072_v30 = vmax.f32 %v1818_v23, 0.0 }
  0xec   :  { %v2075_v29 = vmax.f32 %v1829_v25, 0.0 }
  0xed   :  { %v2073_v31 = vmax.f32 %v1821_v27, 0.0 }
  0xee   :  { %v2137_v32 = vpack.c.bf16 %v2075_v29, %v2074_v28 }
  0xef   :  { %v3112_v33 = vpop.f32.mrb[4].mxu0  ;;  %v2136_v34 = vpack.c.bf16 %v2073_v31, %v2072_v30 }
  0xf0   :  { %v1842_v35 = vadd.f32 %v3112_v33, %v3765_v18  ;;  %v1833_v36 = vpop.f32.mrb[5].mxu0 }
  0xf1   :  { %v1834_v37 = vadd.f32 %v3765_v18, %v1833_v36  ;;  %v3113_v38 = vpop.f32.mrb[6].mxu0  ;;  %3174 = vmatprep.mubr.msk.bf16.mxu1 %vm1686_vm1, %v2136_v34 }
  0xf2   :  { %v1845_v39 = vadd.f32 %v3113_v38, %v3765_v18  ;;  %v1836_v40 = vpop.f32.mrb[7].mxu0  ;;  %3175 = vmatmul.mubr.msk.bf16.vlgmr.msra.gmra.mrb[0].mxu1 %vm1686_vm1, %v2137_v32  ;;  %v2078_v42 = vmax.f32 %v1842_v35, 0.0 }
  0xf3   :  { %v1837_v41 = vadd.f32 %v3765_v18, %v1836_v40  ;;  %v2076_v44 = vmax.f32 %v1834_v37, 0.0 }
  0xf4   :  { %v2079_v43 = vmax.f32 %v1845_v39, 0.0 }
  0xf5   :  { %v2077_v45 = vmax.f32 %v1837_v41, 0.0 }
  0xf6   :  { %v2139_v46 = vpack.c.bf16 %v2079_v43, %v2078_v42 }
  0xf7   :  { %v2138_v47 = vpack.c.bf16 %v2077_v45, %v2076_v44  ;;  %v3116_v48 = vpop.f32.mrb[8].mxu0 }
  0xf8   :  { %v1858_v49 = vadd.f32 %v3116_v48, %v3765_v18  ;;  %v1849_v50 = vpop.f32.mrb[9].mxu0 }
  0xf9   :  { %v1850_v51 = vadd.f32 %v3765_v18, %v1849_v50  ;;  %v3117_v52 = vpop.f32.mrb[10].mxu0  ;;  %3178 = vmatprep.mubr.msk.bf16.mxu1 %vm1686_vm1, %v2138_v47 }
  0xfa   :  { %v1861_v53 = vadd.f32 %v3117_v52, %v3765_v18  ;;  %v1852_v54 = vpop.f32.mrb[11].mxu0  ;;  %3179 = vmatmul.mubr.msk.bf16.gmra.mrb[4].mxu1 %vm1686_vm1, %v2139_v46  ;;  %v2082_v56 = vmax.f32 %v1858_v49, 0.0 }
  0xfb   :  { %v1853_v55 = vadd.f32 %v3765_v18, %v1852_v54  ;;  %v2080_v58 = vmax.f32 %v1850_v51, 0.0 }
  0xfc   :  { %v2083_v57 = vmax.f32 %v1861_v53, 0.0 }
  0xfd   :  { %v2081_v59 = vmax.f32 %v1853_v55, 0.0 }
  0xfe   :  { %v2141_v60 = vpack.c.bf16 %v2083_v57, %v2082_v56 }
  0xff   :  { %v2140_v61 = vpack.c.bf16 %v2081_v59, %v2080_v58  ;;  %v3120_v62 = vpop.f32.mrb[12].mxu0 }
 0x100   :  { %v1874_v1 = vadd.f32 %v3120_v62, %v3765_v18  ;;  %v1865_v6 = vpop.f32.mrb[13].mxu0 }
 0x101   :  { %v1866_v63 = vadd.f32 %v3765_v18, %v1865_v6  ;;  %v3121_v0 = vpop.f32.mrb[14].mxu0  ;;  %3182 = vmatprep.mubr.msk.bf16.mxu1 %vm1686_vm1, %v2140_v61 }
 0x102   :  { %v1877_v2 = vadd.f32 %v3121_v0, %v3765_v18  ;;  %v1868_v3 = vpop.f32.mrb[15].mxu0  ;;  %3183 = vmatmul.mubr.msk.bf16.gmra.mrb[8].mxu1 %vm1686_vm1, %v2141_v60  ;;  %v2086_v5 = vmax.f32 %v1874_v1, 0.0 }
 0x103   :  { %v1869_v4 = vadd.f32 %v3765_v18, %v1868_v3  ;;  %v2084_v8 = vmax.f32 %v1866_v63, 0.0 }
 0x104   :  { %v2087_v7 = vmax.f32 %v1877_v2, 0.0 }
 0x105   :  { %v2085_v9 = vmax.f32 %v1869_v4, 0.0 }
 0x106   :  { %v2143_v10 = vpack.c.bf16 %v2087_v7, %v2086_v5 }
 0x107   :  { %v2142_v11 = vpack.c.bf16 %v2085_v9, %v2084_v8  ;;  %v3124_v12 = vpop.f32.mrb[16].mxu0 }
 0x108   :  { %v1890_v13 = vadd.f32 %v3124_v12, %v3765_v18  ;;  %v1881_v14 = vpop.f32.mrb[17].mxu0 }
 0x109   :  { %v1882_v15 = vadd.f32 %v3765_v18, %v1881_v14  ;;  %v3125_v16 = vpop.f32.mrb[18].mxu0  ;;  %3186 = vmatprep.mubr.msk.bf16.mxu1 %vm1686_vm1, %v2142_v11 }
 0x10a   :  { %v1893_v17 = vadd.f32 %v3125_v16, %v3765_v18  ;;  %v1884_v19 = vpop.f32.mrb[19].mxu0  ;;  %3187 = vmatmul.mubr.msk.bf16.gmra.mrb[12].mxu1 %vm1686_vm1, %v2143_v10  ;;  %v2090_v21 = vmax.f32 %v1890_v13, 0.0 }
 0x10b   :  { %v1885_v20 = vadd.f32 %v3765_v18, %v1884_v19  ;;  %v2088_v24 = vmax.f32 %v1882_v15, 0.0 }
 0x10c   :  { %v2091_v23 = vmax.f32 %v1893_v17, 0.0 }
 0x10d   :  { %v2089_v25 = vmax.f32 %v1885_v20, 0.0 }
 0x10e   :  { %v2145_v26 = vpack.c.bf16 %v2091_v23, %v2090_v21 }
 0x10f   :  { %v2144_v27 = vpack.c.bf16 %v2089_v25, %v2088_v24  ;;  %v3128_v28 = vpop.f32.mrb[20].mxu0 }
 0x110   :  { %v1906_v29 = vadd.f32 %v3128_v28, %v3765_v18  ;;  %v1897_v30 = vpop.f32.mrb[21].mxu0 }
 0x111   :  { %v1898_v31 = vadd.f32 %v3765_v18, %v1897_v30  ;;  %v3129_v32 = vpop.f32.mrb[22].mxu0  ;;  %3190 = vmatprep.mubr.msk.bf16.mxu1 %vm1686_vm1, %v2144_v27 }
 0x112   :  { %v1909_v33 = vadd.f32 %v3129_v32, %v3765_v18  ;;  %v1900_v34 = vpop.f32.mrb[23].mxu0  ;;  %3191 = vmatmul.mubr.msk.bf16.gmra.mrb[16].mxu1 %vm1686_vm1, %v2145_v26  ;;  %v2094_v36 = vmax.f32 %v1906_v29, 0.0 }
 0x113   :  { %v1901_v35 = vadd.f32 %v3765_v18, %v1900_v34  ;;  %v2092_v38 = vmax.f32 %v1898_v31, 0.0 }
 0x114   :  { %v2095_v37 = vmax.f32 %v1909_v33, 0.0 }
 0x115   :  { %v2093_v39 = vmax.f32 %v1901_v35, 0.0 }
 0x116   :  { %v2147_v40 = vpack.c.bf16 %v2095_v37, %v2094_v36 }
 0x117   :  { %v2146_v41 = vpack.c.bf16 %v2093_v39, %v2092_v38  ;;  %v3132_v42 = vpop.f32.mrb[24].mxu0 }
 0x118   :  { %v1922_v43 = vadd.f32 %v3132_v42, %v3765_v18  ;;  %v1913_v44 = vpop.f32.mrb[25].mxu0 }
 0x119   :  { %v1914_v45 = vadd.f32 %v3765_v18, %v1913_v44  ;;  %v3133_v46 = vpop.f32.mrb[26].mxu0  ;;  %3194 = vmatprep.mubr.msk.bf16.mxu1 %vm1686_vm1, %v2146_v41 }
 0x11a   :  { %v1925_v47 = vadd.f32 %v3133_v46, %v3765_v18  ;;  %v1916_v48 = vpop.f32.mrb[27].mxu0  ;;  %3195 = vmatmul.mubr.msk.bf16.gmra.mrb[20].mxu1 %vm1686_vm1, %v2147_v40  ;;  %v2098_v50 = vmax.f32 %v1922_v43, 0.0 }
 0x11b   :  { %v1917_v49 = vadd.f32 %v3765_v18, %v1916_v48  ;;  %v2096_v52 = vmax.f32 %v1914_v45, 0.0 }
 0x11c   :  { %v2099_v51 = vmax.f32 %v1925_v47, 0.0 }
 0x11d   :  { %v2097_v53 = vmax.f32 %v1917_v49, 0.0 }
 0x11e   :  { %v2149_v54 = vpack.c.bf16 %v2099_v51, %v2098_v50 }
 0x11f   :  { %v2148_v55 = vpack.c.bf16 %v2097_v53, %v2096_v52  ;;  %v3136_v56 = vpop.f32.mrb[28].mxu0 }
 0x120   :  { %v1938_v57 = vadd.f32 %v3136_v56, %v3765_v18  ;;  %v1929_v58 = vpop.f32.mrb[29].mxu0 }
 0x121   :  { %v1930_v59 = vadd.f32 %v3765_v18, %v1929_v58  ;;  %v3137_v60 = vpop.f32.mrb[30].mxu0  ;;  %3198 = vmatprep.mubr.msk.bf16.mxu1 %vm1686_vm1, %v2148_v55 }
 0x122   :  { %v1941_v61 = vadd.f32 %v3137_v60, %v3765_v18  ;;  %v1932_v62 = vpop.f32.mrb[31].mxu0  ;;  %3199 = vmatmul.mubr.msk.bf16.gmra.mrb[24].mxu1 %vm1686_vm1, %v2149_v54  ;;  %v2102_v6 = vmax.f32 %v1938_v57, 0.0 }
 0x123   :  { %v1933_v1 = vadd.f32 %v3765_v18, %v1932_v62  ;;  %v2100_v0 = vmax.f32 %v1930_v59, 0.0 }
 0x124   :  { %v2103_v63 = vmax.f32 %v1941_v61, 0.0 }
 0x125   :  { %v2101_v2 = vmax.f32 %v1933_v1, 0.0 }
 0x126   :  { %v2151_v3 = vpack.c.bf16 %v2103_v63, %v2102_v6 }
 0x127   :  { %v2150_v4 = vpack.c.bf16 %v2101_v2, %v2100_v0  ;;  %v3140_v5 = vpop.f32.mrb[32].mxu0 }
 0x128   :  { %v1954_v7 = vadd.f32 %v3140_v5, %v3765_v18  ;;  %v1945_v8 = vpop.f32.mrb[33].mxu0 }
 0x129   :  { %v1946_v9 = vadd.f32 %v3765_v18, %v1945_v8  ;;  %v3141_v10 = vpop.f32.mrb[34].mxu0  ;;  %3202 = vmatprep.mubr.msk.bf16.mxu1 %vm1686_vm1, %v2150_v4 }
 0x12a   :  { %v1957_v11 = vadd.f32 %v3141_v10, %v3765_v18  ;;  %v1948_v12 = vpop.f32.mrb[35].mxu0  ;;  %3203 = vmatmul.mubr.msk.bf16.gmra.mrb[28].mxu1 %vm1686_vm1, %v2151_v3  ;;  %v2106_v14 = vmax.f32 %v1954_v7, 0.0 }
 0x12b   :  { %v1949_v13 = vadd.f32 %v3765_v18, %v1948_v12  ;;  %v2104_v16 = vmax.f32 %v1946_v9, 0.0 }
 0x12c   :  { %v2107_v15 = vmax.f32 %v1957_v11, 0.0 }
 0x12d   :  { %v2105_v17 = vmax.f32 %v1949_v13, 0.0 }
 0x12e   :  { %v2153_v19 = vpack.c.bf16 %v2107_v15, %v2106_v14 }
 0x12f   :  { %v2152_v20 = vpack.c.bf16 %v2105_v17, %v2104_v16  ;;  %v3144_v21 = vpop.f32.mrb[36].mxu0 }
 0x130   :  { %v1970_v23 = vadd.f32 %v3144_v21, %v3765_v18  ;;  %v1961_v24 = vpop.f32.mrb[37].mxu0 }
 0x131   :  { %v1962_v25 = vadd.f32 %v3765_v18, %v1961_v24  ;;  %v3145_v26 = vpop.f32.mrb[38].mxu0  ;;  %3206 = vmatprep.mubr.msk.bf16.mxu1 %vm1686_vm1, %v2152_v20 }
 0x132   :  { %v1973_v27 = vadd.f32 %v3145_v26, %v3765_v18  ;;  %v1964_v28 = vpop.f32.mrb[39].mxu0  ;;  %3207 = vmatmul.mubr.msk.bf16.gmra.mrb[32].mxu1 %vm1686_vm1, %v2153_v19  ;;  %v2110_v30 = vmax.f32 %v1970_v23, 0.0 }
 0x133   :  { %v1965_v29 = vadd.f32 %v3765_v18, %v1964_v28  ;;  %v2108_v32 = vmax.f32 %v1962_v25, 0.0 }
 0x134   :  { %v2111_v31 = vmax.f32 %v1973_v27, 0.0 }
 0x135   :  { %v2109_v33 = vmax.f32 %v1965_v29, 0.0 }
 0x136   :  { %v2155_v34 = vpack.c.bf16 %v2111_v31, %v2110_v30 }
 0x137   :  { %v2154_v35 = vpack.c.bf16 %v2109_v33, %v2108_v32  ;;  %v3148_v36 = vpop.f32.mrb[40].mxu0 }
 0x138   :  { %v1986_v37 = vadd.f32 %v3148_v36, %v3765_v18  ;;  %v1977_v38 = vpop.f32.mrb[41].mxu0 }
 0x139   :  { %v1978_v39 = vadd.f32 %v3765_v18, %v1977_v38  ;;  %v3149_v40 = vpop.f32.mrb[42].mxu0  ;;  %3210 = vmatprep.mubr.msk.bf16.mxu1 %vm1686_vm1, %v2154_v35 }
 0x13a   :  { %v1989_v41 = vadd.f32 %v3149_v40, %v3765_v18  ;;  %v1980_v42 = vpop.f32.mrb[43].mxu0  ;;  %3211 = vmatmul.mubr.msk.bf16.gmra.mrb[36].mxu1 %vm1686_vm1, %v2155_v34  ;;  %v2114_v44 = vmax.f32 %v1986_v37, 0.0 }
 0x13b   :  { %v1981_v43 = vadd.f32 %v3765_v18, %v1980_v42  ;;  %v2112_v46 = vmax.f32 %v1978_v39, 0.0 }
 0x13c   :  { %v2115_v45 = vmax.f32 %v1989_v41, 0.0 }
 0x13d   :  { %v2113_v47 = vmax.f32 %v1981_v43, 0.0 }
 0x13e   :  { %v2157_v48 = vpack.c.bf16 %v2115_v45, %v2114_v44 }
 0x13f   :  { %v2156_v49 = vpack.c.bf16 %v2113_v47, %v2112_v46  ;;  %v3152_v50 = vpop.f32.mrb[44].mxu0 }
 0x140   :  { %v2002_v51 = vadd.f32 %v3152_v50, %v3765_v18  ;;  %v1993_v52 = vpop.f32.mrb[45].mxu0 }
 0x141   :  { %v1994_v53 = vadd.f32 %v3765_v18, %v1993_v52  ;;  %v3153_v54 = vpop.f32.mrb[46].mxu0  ;;  %3214 = vmatprep.mubr.msk.bf16.mxu1 %vm1686_vm1, %v2156_v49 }
 0x142   :  { %v2005_v55 = vadd.f32 %v3153_v54, %v3765_v18  ;;  %v1996_v56 = vpop.f32.mrb[47].mxu0  ;;  %3215 = vmatmul.mubr.msk.bf16.gmra.mrb[40].mxu1 %vm1686_vm1, %v2157_v48  ;;  %v2118_v58 = vmax.f32 %v2002_v51, 0.0 }
 0x143   :  { %v1997_v57 = vadd.f32 %v3765_v18, %v1996_v56  ;;  %v2116_v60 = vmax.f32 %v1994_v53, 0.0 }
 0x144   :  { %v2119_v59 = vmax.f32 %v2005_v55, 0.0 }
 0x145   :  { %v2117_v61 = vmax.f32 %v1997_v57, 0.0 }
 0x146   :  { %v2159_v62 = vpack.c.bf16 %v2119_v59, %v2118_v58  ;;  %v3297_v58 = vld [vmem:[%s3979_s4] sm:$0xff]   ;;  %v3299_v59 = vld [vmem:[%s3979_s4 + $0x10] sm:$0xff]  }
 0x147   :  { %v2158_v1 = vpack.c.bf16 %v2117_v61, %v2116_v60  ;;  %v3156_v6 = vpop.f32.mrb[48].mxu0  ;;  %3239 = vmatpush3.bf16.msra.mxu0 %v3297_v58  ;;  %v3300_v60 = vld [vmem:[%s3979_s4 + $0x18] sm:$0xff]   ;;  %v3301_v61 = vld [vmem:[%s3979_s4 + $0x20] sm:$0xff]  }
 0x148   :  { %v2018_v63 = vadd.f32 %v3156_v6, %v3765_v18  ;;  %v2009_v0 = vpop.f32.mrb[49].mxu0  ;;  %3240 = vmatprep.subr.bf16.mxu0 %v3305_v22 }
 0x149   :  { %v2010_v2 = vadd.f32 %v3765_v18, %v2009_v0  ;;  %v3157_v3 = vpop.f32.mrb[50].mxu0  ;;  %3218 = vmatprep.mubr.msk.bf16.mxu1 %vm1686_vm1, %v2158_v1  ;;  %v3890_v1 = vld [vmem:[%s3978_s3] ss:$0 sm:$0xff] }
 0x14a   :  { %v2021_v4 = vadd.f32 %v3157_v3, %v3765_v18  ;;  %v2012_v5 = vpop.f32.mrb[51].mxu0  ;;  %3219 = vmatmul.mubr.msk.bf16.gmra.mrb[44].mxu1 %vm1686_vm1, %v2159_v62  ;;  %v2122_v8 = vmax.f32 %v2018_v63, 0.0  ;;  %v3302_v62 = vld [vmem:[%s3979_s4 + $0x28] sm:$0xff]  }
 0x14b   :  { %v2013_v7 = vadd.f32 %v3765_v18, %v2012_v5  ;;  %v2120_v10 = vmax.f32 %v2010_v2, 0.0 }
 0x14c   :  { %v2123_v9 = vmax.f32 %v2021_v4, 0.0 }
 0x14d   :  { %v2121_v11 = vmax.f32 %v2013_v7, 0.0 }
 0x14e   :  { %v2161_v12 = vpack.c.bf16 %v2123_v9, %v2122_v8 }
 0x14f   :  { %v2160_v13 = vpack.c.bf16 %v2121_v11, %v2120_v10  ;;  %v3160_v14 = vpop.f32.mrb[52].mxu0 }
 0x150   :  { %v2034_v15 = vadd.f32 %v3160_v14, %v3765_v18  ;;  %v2025_v16 = vpop.f32.mrb[53].mxu0 }
 0x151   :  { %v2026_v17 = vadd.f32 %v3765_v18, %v2025_v16  ;;  %v3161_v19 = vpop.f32.mrb[54].mxu0  ;;  %3222 = vmatprep.mubr.msk.bf16.mxu1 %vm1686_vm1, %v2160_v13  ;;  %v3303_v13 = vld [vmem:[%s3979_s4 + $0x30] sm:$0xff]  }
 0x152   :  { %v2037_v20 = vadd.f32 %v3161_v19, %v3765_v18  ;;  %v2028_v21 = vpop.f32.mrb[55].mxu0  ;;  %3223 = vmatmul.mubr.msk.bf16.gmra.mrb[48].mxu1 %vm1686_vm1, %v2161_v12  ;;  %v2126_v24 = vmax.f32 %v2034_v15, 0.0 }
 0x153   :  { %v2029_v23 = vadd.f32 %v3765_v18, %v2028_v21  ;;  %v2124_v26 = vmax.f32 %v2026_v17, 0.0 }
 0x154   :  { %v2127_v25 = vmax.f32 %v2037_v20, 0.0  ;;  %v3304_v20 = vld [vmem:[%s3979_s4 + $0x38] sm:$0xff]  }
 0x155   :  { %v2125_v27 = vmax.f32 %v2029_v23, 0.0 }
 0x156   :  { %v2163_v28 = vpack.c.bf16 %v2127_v25, %v2126_v24 }
 0x157   :  { %v2162_v29 = vpack.c.bf16 %v2125_v27, %v2124_v26  ;;  %v3164_v30 = vpop.f32.mrb[56].mxu0 }
 0x158   :  { %v2050_v31 = vadd.f32 %v3164_v30, %v3765_v18  ;;  %v2041_v32 = vpop.f32.mrb[57].mxu0 }
 0x159   :  { %v2042_v33 = vadd.f32 %v3765_v18, %v2041_v32  ;;  %v3165_v34 = vpop.f32.mrb[58].mxu0  ;;  %3226 = vmatprep.mubr.msk.bf16.mxu1 %vm1686_vm1, %v2162_v29 }
 0x15a   :  { %v2053_v35 = vadd.f32 %v3165_v34, %v3765_v18  ;;  %v2044_v36 = vpop.f32.mrb[59].mxu0  ;;  %3227 = vmatmul.mubr.msk.bf16.gmra.mrb[52].mxu1 %vm1686_vm1, %v2163_v28  ;;  %v2130_v38 = vmax.f32 %v2050_v31, 0.0 }
 0x15b   :  { %v2045_v37 = vadd.f32 %v3765_v18, %v2044_v36  ;;  %v2128_v40 = vmax.f32 %v2042_v33, 0.0 }
 0x15c   :  { %v2131_v39 = vmax.f32 %v2053_v35, 0.0 }
 0x15d   :  { %v2129_v41 = vmax.f32 %v2045_v37, 0.0 }
 0x15e   :  { %v2165_v42 = vpack.c.bf16 %v2131_v39, %v2130_v38 }
 0x15f   :  { %v2164_v43 = vpack.c.bf16 %v2129_v41, %v2128_v40  ;;  %v3168_v44 = vpop.f32.mrb[60].mxu0 }
 0x160   :  { %v2066_v45 = vadd.f32 %v3168_v44, %v3765_v18  ;;  %v2057_v46 = vpop.f32.mrb[61].mxu0 }
 0x161   :  { %v2058_v47 = vadd.f32 %v3765_v18, %v2057_v46  ;;  %v3169_v48 = vpop.f32.mrb[62].mxu0  ;;  %3230 = vmatprep.mubr.msk.bf16.mxu1 %vm1686_vm1, %v2164_v43 }
 0x162   :  { %v2069_v49 = vadd.f32 %v3169_v48, %v3765_v18  ;;  %v2060_v50 = vpop.f32.mrb[63].mxu0  ;;  %3231 = vmatmul.mubr.msk.bf16.gmra.mrb[56].mxu1 %vm1686_vm1, %v2165_v42  ;;  %v2134_v52 = vmax.f32 %v2066_v45, 0.0 }
 0x163   :  { %v2061_v51 = vadd.f32 %v3765_v18, %v2060_v50  ;;  %v2132_v54 = vmax.f32 %v2058_v47, 0.0  ;;  %v3298_v18 = vld [vmem:[%s3979_s4 + $0x8] sm:$0xff]   ;;  %s3307_s4 = smov 32  }
 0x164   :  { %v2135_v53 = vmax.f32 %v2069_v49, 0.0  ;;  %3241 = vmatpush3.bf16.msra.mxu0 %v3298_v18 }
 0x165   :  { %v2133_v55 = vmax.f32 %v2061_v51, 0.0  ;;  %3242 = vmatprep.subr.bf16.mxu0 %v3305_v22 }
 0x166   :  { %v2167_v56 = vpack.c.bf16 %v2135_v53, %v2134_v52 }
 0x167   :  { %v2166_v57 = vpack.c.bf16 %v2133_v55, %v2132_v54 }
 0x168   :  { %3243 = vmatpush3.bf16.msra.mxu0 %v3299_v59 }
 0x169   :  { %3234 = vmatprep.mubr.msk.bf16.mxu1 %vm1686_vm1, %v2166_v57  ;;  %3244 = vmatprep.subr.bf16.mxu0 %v3305_v22 }
 0x16a   :  { %3235 = vmatmul.mubr.msk.bf16.gmra.mrb[60].mxu1 %vm1686_vm1, %v2167_v56 }
 0x16c   :  { %3245 = vmatpush3.bf16.msra.mxu0 %v3300_v60 }
 0x16d   :  { %3246 = vmatprep.subr.bf16.mxu0 %v3305_v22 }
 0x170   :  { %3247 = vmatpush3.bf16.msra.mxu0 %v3301_v61 }
 0x171   :  { %3248 = vmatprep.subr.bf16.mxu0 %v3305_v22 }
 0x174   :  { %3249 = vmatpush3.bf16.msra.mxu0 %v3302_v62 }
 0x175   :  { %3250 = vmatprep.subr.bf16.mxu0 %v3305_v22 }
 0x178   :  { %3251 = vmatpush3.bf16.msra.mxu0 %v3303_v13 }
 0x179   :  { %3252 = vmatprep.subr.bf16.mxu0 %v3305_v22 }
 0x17c   :  { %3253 = vmatpush3.bf16.msra.mxu0 %v3304_v20 }
 0x1c5   :  { %v3176_v6 = vpop.f32.mrb[0].mxu1 }
 0x1c6   :  { %v2321_v63 = vpop.f32.mrb[1].mxu1  ;;  %v2330_v4 = vadd.f32 %v3176_v6, %v3890_v1 }
 0x1c7   :  { %v2322_v0 = vadd.f32 %v3890_v1, %v2321_v63  ;;  %v3177_v2 = vpop.f32.mrb[2].mxu1 }
 0x1c8   :  { %v2324_v3 = vpop.f32.mrb[3].mxu1  ;;  %v2333_v8 = vadd.f32 %v3177_v2, %v3890_v1  ;;  %v2578_v10 = vmax.f32 %v2330_v4, 0.0 }
 0x1c9   :  { %v2325_v5 = vadd.f32 %v3890_v1, %v2324_v3  ;;  %v2576_v7 = vmax.f32 %v2322_v0, 0.0 }
 0x1ca   :  { %v2579_v15 = vmax.f32 %v2333_v8, 0.0 }
 0x1cb   :  { %v2577_v9 = vmax.f32 %v2325_v5, 0.0 }
 0x1cd   :  { %v2640_v11 = vadd.f32 %v2577_v9, %v2576_v7  ;;  %v3180_v12 = vpop.f32.mrb[4].mxu1 }
 0x1ce   :  { %v2337_v14 = vpop.f32.mrb[5].mxu1  ;;  %v2346_v23 = vadd.f32 %v3180_v12, %v3890_v1 }
 0x1cf   :  { %v2641_v16 = vadd.f32 %v2640_v11, %v2578_v10  ;;  %v2338_v17 = vadd.f32 %v3890_v1, %v2337_v14  ;;  %v3181_v19 = vpop.f32.mrb[6].mxu1 }
 0x1d0   :  { %v2340_v21 = vpop.f32.mrb[7].mxu1  ;;  %v2349_v28 = vadd.f32 %v3181_v19, %v3890_v1  ;;  %v2582_v30 = vmax.f32 %v2346_v23, 0.0 }
 0x1d1   :  { %v2580_v24 = vmax.f32 %v2338_v17, 0.0  ;;  %v2642_v25 = vadd.f32 %v2641_v16, %v2579_v15  ;;  %v2341_v26 = vadd.f32 %v3890_v1, %v2340_v21 }
 0x1d2   :  { %v2583_v34 = vmax.f32 %v2349_v28, 0.0 }
 0x1d3   :  { %v2643_v27 = vadd.f32 %v2642_v25, %v2580_v24  ;;  %v2581_v29 = vmax.f32 %v2341_v26, 0.0 }
 0x1d5   :  { %v2644_v31 = vadd.f32 %v2643_v27, %v2581_v29  ;;  %v3184_v32 = vpop.f32.mrb[8].mxu1 }
 0x1d6   :  { %v2353_v33 = vpop.f32.mrb[9].mxu1  ;;  %v2362_v39 = vadd.f32 %v3184_v32, %v3890_v1 }
 0x1d7   :  { %v2645_v35 = vadd.f32 %v2644_v31, %v2582_v30  ;;  %v2354_v36 = vadd.f32 %v3890_v1, %v2353_v33  ;;  %v3185_v37 = vpop.f32.mrb[10].mxu1 }
 0x1d8   :  { %v2356_v38 = vpop.f32.mrb[11].mxu1  ;;  %v2365_v44 = vadd.f32 %v3185_v37, %v3890_v1  ;;  %v2586_v46 = vmax.f32 %v2362_v39, 0.0 }
 0x1d9   :  { %v2584_v40 = vmax.f32 %v2354_v36, 0.0  ;;  %v2646_v41 = vadd.f32 %v2645_v35, %v2583_v34  ;;  %v2357_v42 = vadd.f32 %v3890_v1, %v2356_v38 }
 0x1da   :  { %v2587_v50 = vmax.f32 %v2365_v44, 0.0 }
 0x1db   :  { %v2647_v43 = vadd.f32 %v2646_v41, %v2584_v40  ;;  %v2585_v45 = vmax.f32 %v2357_v42, 0.0 }
 0x1dd   :  { %v2648_v47 = vadd.f32 %v2647_v43, %v2585_v45  ;;  %v3188_v48 = vpop.f32.mrb[12].mxu1 }
 0x1de   :  { %v2369_v49 = vpop.f32.mrb[13].mxu1  ;;  %v2378_v55 = vadd.f32 %v3188_v48, %v3890_v1 }
 0x1df   :  { %v2649_v51 = vadd.f32 %v2648_v47, %v2586_v46  ;;  %v2370_v52 = vadd.f32 %v3890_v1, %v2369_v49  ;;  %v3189_v53 = vpop.f32.mrb[14].mxu1 }
 0x1e0   :  { %v2372_v54 = vpop.f32.mrb[15].mxu1  ;;  %v2381_v59 = vadd.f32 %v3189_v53, %v3890_v1  ;;  %v2590_v61 = vmax.f32 %v2378_v55, 0.0 }
 0x1e1   :  { %v2588_v56 = vmax.f32 %v2370_v52, 0.0  ;;  %v2650_v57 = vadd.f32 %v2649_v51, %v2587_v50  ;;  %v2373_v58 = vadd.f32 %v3890_v1, %v2372_v54 }
 0x1e2   :  { %v2591_v0 = vmax.f32 %v2381_v59, 0.0 }
 0x1e3   :  { %v2651_v18 = vadd.f32 %v2650_v57, %v2588_v56  ;;  %v2589_v60 = vmax.f32 %v2373_v58, 0.0 }
 0x1e5   :  { %v2652_v62 = vadd.f32 %v2651_v18, %v2589_v60  ;;  %v3192_v6 = vpop.f32.mrb[16].mxu1 }
 0x1e6   :  { %v2385_v63 = vpop.f32.mrb[17].mxu1  ;;  %v2394_v5 = vadd.f32 %v3192_v6, %v3890_v1 }
 0x1e7   :  { %v2653_v2 = vadd.f32 %v2652_v62, %v2590_v61  ;;  %v2386_v3 = vadd.f32 %v3890_v1, %v2385_v63  ;;  %v3193_v22 = vpop.f32.mrb[18].mxu1 }
 0x1e8   :  { %v2388_v4 = vpop.f32.mrb[19].mxu1  ;;  %v2397_v11 = vadd.f32 %v3193_v22, %v3890_v1  ;;  %v2594_v13 = vmax.f32 %v2394_v5, 0.0 }
 0x1e9   :  { %v2592_v7 = vmax.f32 %v2386_v3, 0.0  ;;  %v2654_v8 = vadd.f32 %v2653_v2, %v2591_v0  ;;  %v2389_v9 = vadd.f32 %v3890_v1, %v2388_v4 }
 0x1ea   :  { %v2595_v17 = vmax.f32 %v2397_v11, 0.0 }
 0x1eb   :  { %v2655_v10 = vadd.f32 %v2654_v8, %v2592_v7  ;;  %v2593_v12 = vmax.f32 %v2389_v9, 0.0 }
 0x1ed   :  { %v2656_v14 = vadd.f32 %v2655_v10, %v2593_v12  ;;  %v3196_v15 = vpop.f32.mrb[20].mxu1 }
 0x1ee   :  { %v2401_v16 = vpop.f32.mrb[21].mxu1  ;;  %v2410_v24 = vadd.f32 %v3196_v15, %v3890_v1 }
 0x1ef   :  { %v2657_v19 = vadd.f32 %v2656_v14, %v2594_v13  ;;  %v2402_v20 = vadd.f32 %v3890_v1, %v2401_v16  ;;  %v3197_v21 = vpop.f32.mrb[22].mxu1 }
 0x1f0   :  { %v2404_v23 = vpop.f32.mrb[23].mxu1  ;;  %v2413_v29 = vadd.f32 %v3197_v21, %v3890_v1  ;;  %v2598_v31 = vmax.f32 %v2410_v24, 0.0 }
 0x1f1   :  { %v2596_v25 = vmax.f32 %v2402_v20, 0.0  ;;  %v2658_v26 = vadd.f32 %v2657_v19, %v2595_v17  ;;  %v2405_v27 = vadd.f32 %v3890_v1, %v2404_v23 }
 0x1f2   :  { %v2599_v35 = vmax.f32 %v2413_v29, 0.0 }
 0x1f3   :  { %v2659_v28 = vadd.f32 %v2658_v26, %v2596_v25  ;;  %v2597_v30 = vmax.f32 %v2405_v27, 0.0 }
 0x1f5   :  { %v2660_v32 = vadd.f32 %v2659_v28, %v2597_v30  ;;  %v3200_v33 = vpop.f32.mrb[24].mxu1 }
 0x1f6   :  { %v2417_v34 = vpop.f32.mrb[25].mxu1  ;;  %v2426_v40 = vadd.f32 %v3200_v33, %v3890_v1 }
 0x1f7   :  { %v2661_v36 = vadd.f32 %v2660_v32, %v2598_v31  ;;  %v2418_v37 = vadd.f32 %v3890_v1, %v2417_v34  ;;  %v3201_v38 = vpop.f32.mrb[26].mxu1 }
 0x1f8   :  { %v2420_v39 = vpop.f32.mrb[27].mxu1  ;;  %v2429_v45 = vadd.f32 %v3201_v38, %v3890_v1  ;;  %v2602_v47 = vmax.f32 %v2426_v40, 0.0 }
 0x1f9   :  { %v2600_v41 = vmax.f32 %v2418_v37, 0.0  ;;  %v2662_v42 = vadd.f32 %v2661_v36, %v2599_v35  ;;  %v2421_v43 = vadd.f32 %v3890_v1, %v2420_v39 }
 0x1fa   :  { %v2603_v51 = vmax.f32 %v2429_v45, 0.0 }
 0x1fb   :  { %v2663_v44 = vadd.f32 %v2662_v42, %v2600_v41  ;;  %v2601_v46 = vmax.f32 %v2421_v43, 0.0 }
 0x1fd   :  { %v2664_v48 = vadd.f32 %v2663_v44, %v2601_v46  ;;  %v3204_v49 = vpop.f32.mrb[28].mxu1 }
 0x1fe   :  { %v2433_v50 = vpop.f32.mrb[29].mxu1  ;;  %v2442_v56 = vadd.f32 %v3204_v49, %v3890_v1 }
 0x1ff   :  { %v2665_v52 = vadd.f32 %v2664_v48, %v2602_v47  ;;  %v2434_v53 = vadd.f32 %v3890_v1, %v2433_v50  ;;  %v3205_v54 = vpop.f32.mrb[30].mxu1 }
 0x200   :  { %v2436_v55 = vpop.f32.mrb[31].mxu1  ;;  %v2445_v60 = vadd.f32 %v3205_v54, %v3890_v1  ;;  %v2606_v62 = vmax.f32 %v2442_v56, 0.0 }
 0x201   :  { %v2604_v57 = vmax.f32 %v2434_v53, 0.0  ;;  %v2666_v58 = vadd.f32 %v2665_v52, %v2603_v51  ;;  %v2437_v18 = vadd.f32 %v3890_v1, %v2436_v55 }
 0x202   :  { %v2607_v2 = vmax.f32 %v2445_v60, 0.0 }
 0x203   :  { %v2667_v59 = vadd.f32 %v2666_v58, %v2604_v57  ;;  %v2605_v61 = vmax.f32 %v2437_v18, 0.0 }
 0x205   :  { %v2668_v6 = vadd.f32 %v2667_v59, %v2605_v61  ;;  %v3208_v63 = vpop.f32.mrb[32].mxu1 }
 0x206   :  { %v2449_v0 = vpop.f32.mrb[33].mxu1  ;;  %v2458_v8 = vadd.f32 %v3208_v63, %v3890_v1 }
 0x207   :  { %v2669_v3 = vadd.f32 %v2668_v6, %v2606_v62  ;;  %v2450_v22 = vadd.f32 %v3890_v1, %v2449_v0  ;;  %v3209_v4 = vpop.f32.mrb[34].mxu1 }
 0x208   :  { %v2452_v5 = vpop.f32.mrb[35].mxu1  ;;  %v2461_v11 = vadd.f32 %v3209_v4, %v3890_v1  ;;  %v2610_v13 = vmax.f32 %v2458_v8, 0.0 }
 0x209   :  { %v3933_v7 = vadd.f32 %v2669_v3, %v2607_v2  ;;  %v2453_v9 = vadd.f32 %v3890_v1, %v2452_v5  ;;  %v2608_v10 = vmax.f32 %v2450_v22, 0.0 }
 0x20a   :  { %v2611_v17 = vmax.f32 %v2461_v11, 0.0 }
 0x20b   :  { %v2609_v12 = vmax.f32 %v2453_v9, 0.0 }
 0x20d   :  { %v2677_v14 = vadd.f32 %v2609_v12, %v2608_v10  ;;  %v3212_v15 = vpop.f32.mrb[36].mxu1 }
 0x20e   :  { %v2465_v16 = vpop.f32.mrb[37].mxu1  ;;  %v2474_v24 = vadd.f32 %v3212_v15, %v3890_v1 }
 0x20f   :  { %v2678_v19 = vadd.f32 %v2677_v14, %v2610_v13  ;;  %v2466_v20 = vadd.f32 %v3890_v1, %v2465_v16  ;;  %v3213_v21 = vpop.f32.mrb[38].mxu1 }
 0x210   :  { %v2468_v23 = vpop.f32.mrb[39].mxu1  ;;  %v2477_v29 = vadd.f32 %v3213_v21, %v3890_v1  ;;  %v2614_v31 = vmax.f32 %v2474_v24, 0.0 }
 0x211   :  { %v2612_v25 = vmax.f32 %v2466_v20, 0.0  ;;  %v2679_v26 = vadd.f32 %v2678_v19, %v2611_v17  ;;  %v2469_v27 = vadd.f32 %v3890_v1, %v2468_v23 }
 0x212   :  { %v2615_v35 = vmax.f32 %v2477_v29, 0.0 }
 0x213   :  { %v2680_v28 = vadd.f32 %v2679_v26, %v2612_v25  ;;  %v2613_v30 = vmax.f32 %v2469_v27, 0.0 }
 0x215   :  { %v2681_v32 = vadd.f32 %v2680_v28, %v2613_v30  ;;  %v3216_v33 = vpop.f32.mrb[40].mxu1 }
 0x216   :  { %v2481_v34 = vpop.f32.mrb[41].mxu1  ;;  %v2490_v40 = vadd.f32 %v3216_v33, %v3890_v1 }
 0x217   :  { %v2682_v36 = vadd.f32 %v2681_v32, %v2614_v31  ;;  %v2482_v37 = vadd.f32 %v3890_v1, %v2481_v34  ;;  %v3217_v38 = vpop.f32.mrb[42].mxu1 }
 0x218   :  { %v2484_v39 = vpop.f32.mrb[43].mxu1  ;;  %v2493_v45 = vadd.f32 %v3217_v38, %v3890_v1  ;;  %v2618_v47 = vmax.f32 %v2490_v40, 0.0 }
 0x219   :  { %v2616_v41 = vmax.f32 %v2482_v37, 0.0  ;;  %v2683_v42 = vadd.f32 %v2682_v36, %v2615_v35  ;;  %v2485_v43 = vadd.f32 %v3890_v1, %v2484_v39 }
 0x21a   :  { %v2619_v51 = vmax.f32 %v2493_v45, 0.0 }
 0x21b   :  { %v2684_v44 = vadd.f32 %v2683_v42, %v2616_v41  ;;  %v2617_v46 = vmax.f32 %v2485_v43, 0.0 }
 0x21d   :  { %v2685_v48 = vadd.f32 %v2684_v44, %v2617_v46  ;;  %v3220_v49 = vpop.f32.mrb[44].mxu1  ;;  %v2671_v46 = vrot.slane %v3933_v7, 4 }
 0x21e   :  { %v2497_v50 = vpop.f32.mrb[45].mxu1  ;;  %v2506_v56 = vadd.f32 %v3220_v49, %v3890_v1 }
 0x21f   :  { %v2686_v52 = vadd.f32 %v2685_v48, %v2618_v47  ;;  %v2498_v53 = vadd.f32 %v3890_v1, %v2497_v50  ;;  %v3221_v54 = vpop.f32.mrb[46].mxu1 }
 0x220   :  { %v2500_v55 = vpop.f32.mrb[47].mxu1  ;;  %v2509_v60 = vadd.f32 %v3221_v54, %v3890_v1  ;;  %v2622_v62 = vmax.f32 %v2506_v56, 0.0  ;;  %v2672_v54 = vadd.f32 %v2671_v46, %v3933_v7 }
 0x221   :  { %v2620_v57 = vmax.f32 %v2498_v53, 0.0  ;;  %v2687_v58 = vadd.f32 %v2686_v52, %v2619_v51  ;;  %v2501_v18 = vadd.f32 %v3890_v1, %v2500_v55 }
 0x222   :  { %v2623_v2 = vmax.f32 %v2509_v60, 0.0 }
 0x223   :  { %v2688_v59 = vadd.f32 %v2687_v58, %v2620_v57  ;;  %v2621_v61 = vmax.f32 %v2501_v18, 0.0 }
 0x225   :  { %v2689_v6 = vadd.f32 %v2688_v59, %v2621_v61  ;;  %v3224_v63 = vpop.f32.mrb[48].mxu1 }
 0x226   :  { %v2513_v0 = vpop.f32.mrb[49].mxu1  ;;  %v2522_v8 = vadd.f32 %v3224_v63, %v3890_v1 }
 0x227   :  { %v2690_v3 = vadd.f32 %v2689_v6, %v2622_v62  ;;  %v2514_v22 = vadd.f32 %v3890_v1, %v2513_v0  ;;  %v3225_v4 = vpop.f32.mrb[50].mxu1 }
 0x228   :  { %v2516_v5 = vpop.f32.mrb[51].mxu1  ;;  %v2525_v13 = vadd.f32 %v3225_v4, %v3890_v1  ;;  %v2626_v15 = vmax.f32 %v2522_v8, 0.0 }
 0x229   :  { %v2624_v9 = vmax.f32 %v2514_v22, 0.0  ;;  %v2691_v10 = vadd.f32 %v2690_v3, %v2623_v2  ;;  %v2517_v11 = vadd.f32 %v3890_v1, %v2516_v5  ;;  %v2673_v2 = vrot.slane %v2672_v54, 2 }
 0x22a   :  { %v2627_v20 = vmax.f32 %v2525_v13, 0.0 }
 0x22b   :  { %v2692_v12 = vadd.f32 %v2691_v10, %v2624_v9  ;;  %v2625_v14 = vmax.f32 %v2517_v11, 0.0  ;;  %v2674_v5 = vadd.f32 %v2673_v2, %v2672_v54 }
 0x22d   :  { %v2693_v16 = vadd.f32 %v2692_v12, %v2625_v14  ;;  %v3228_v17 = vpop.f32.mrb[52].mxu1  ;;  %v2675_v10 = vrot.slane %v2674_v5, 1 }
 0x22e   :  { %v2529_v19 = vpop.f32.mrb[53].mxu1  ;;  %v2538_v26 = vadd.f32 %v3228_v17, %v3890_v1 }
 0x22f   :  { %v2694_v21 = vadd.f32 %v2693_v16, %v2626_v15  ;;  %v2530_v23 = vadd.f32 %v3890_v1, %v2529_v19  ;;  %v3229_v24 = vpop.f32.mrb[54].mxu1  ;;  %v2676_v12 = vadd.f32 %v2675_v10, %v2674_v5 }
 0x230   :  { %v2532_v25 = vpop.f32.mrb[55].mxu1  ;;  %v2541_v31 = vadd.f32 %v3229_v24, %v3890_v1  ;;  %v2630_v33 = vmax.f32 %v2538_v26, 0.0 }
 0x231   :  { %v2628_v27 = vmax.f32 %v2530_v23, 0.0  ;;  %v2695_v28 = vadd.f32 %v2694_v21, %v2627_v20  ;;  %v2533_v29 = vadd.f32 %v3890_v1, %v2532_v25  ;;  %v2715_v16 = vmul.f32 0.00390625, %v2676_v12 }
 0x232   :  { %v2631_v37 = vmax.f32 %v2541_v31, 0.0 }
 0x233   :  { %v2696_v30 = vadd.f32 %v2695_v28, %v2628_v27  ;;  %v2629_v32 = vmax.f32 %v2533_v29, 0.0  ;;  %v3016_v27 = vld [vmem:[%s3980_s5] ss:$0 sm:$0xff] }
 0x235   :  { %v2697_v34 = vadd.f32 %v2696_v30, %v2629_v32  ;;  %v3232_v35 = vpop.f32.mrb[56].mxu1 }
 0x236   :  { %v2545_v36 = vpop.f32.mrb[57].mxu1  ;;  %v2554_v42 = vadd.f32 %v3232_v35, %v3890_v1 }
 0x237   :  { %v2698_v38 = vadd.f32 %v2697_v34, %v2630_v33  ;;  %v2546_v39 = vadd.f32 %v3890_v1, %v2545_v36  ;;  %v3233_v40 = vpop.f32.mrb[58].mxu1 }
 0x238   :  { %v2548_v41 = vpop.f32.mrb[59].mxu1  ;;  %v2557_v48 = vadd.f32 %v3233_v40, %v3890_v1  ;;  %v2634_v50 = vmax.f32 %v2554_v42, 0.0 }
 0x239   :  { %v2632_v43 = vmax.f32 %v2546_v39, 0.0  ;;  %v2699_v44 = vadd.f32 %v2698_v38, %v2631_v37  ;;  %v2549_v45 = vadd.f32 %v3890_v1, %v2548_v41 }
 0x23a   :  { %v2635_v55 = vmax.f32 %v2557_v48, 0.0 }
 0x23b   :  { %v2700_v47 = vadd.f32 %v2699_v44, %v2632_v43  ;;  %v2633_v49 = vmax.f32 %v2549_v45, 0.0 }
 0x23d   :  { %v2701_v51 = vadd.f32 %v2700_v47, %v2633_v49  ;;  %v3236_v52 = vpop.f32.mrb[60].mxu1 }
 0x23e   :  { %v2561_v53 = vpop.f32.mrb[61].mxu1  ;;  %v2570_v59 = vadd.f32 %v3236_v52, %v3890_v1 }
 0x23f   :  { %v2702_v56 = vadd.f32 %v2701_v51, %v2634_v50  ;;  %v2562_v57 = vadd.f32 %v3890_v1, %v2561_v53  ;;  %v3237_v58 = vpop.f32.mrb[62].mxu1 }
 0x240   :  { %v2564_v18 = vpop.f32.mrb[63].mxu1  ;;  %v2573_v63 = vadd.f32 %v3237_v58, %v3890_v1  ;;  %v2638_v3 = vmax.f32 %v2570_v59, 0.0 }
 0x241   :  { %v2636_v60 = vmax.f32 %v2562_v57, 0.0  ;;  %v2703_v61 = vadd.f32 %v2702_v56, %v2635_v55  ;;  %v2565_v62 = vadd.f32 %v3890_v1, %v2564_v18  ;;  %v2717_v1 = vpack.c.bf16 %v2715_v16, %v2715_v16 }
 0x242   :  { %v2639_v7 = vmax.f32 %v2573_v63, 0.0 }
 0x243   :  { %v2704_v6 = vadd.f32 %v2703_v61, %v2636_v60  ;;  %v2637_v0 = vmax.f32 %v2565_v62, 0.0  ;;  %v2744_v23 = vunpack.c.l.b16 %v2717_v1 }
 0x245   :  { %v2705_v22 = vadd.f32 %v2704_v6, %v2637_v0 }
 0x247   :  { %v2706_v4 = vadd.f32 %v2705_v22, %v2638_v3 }
 0x249   :  { %v2707_v8 = vadd.f32 %v2706_v4, %v2639_v7 }
 0x24b   :  { %v2708_v9 = vrot.slane %v2707_v8, 4 }
 0x24d   :  { %v2709_v11 = vadd.f32 %v2708_v9, %v2707_v8 }
 0x24f   :  { %v2710_v13 = vrot.slane %v2709_v11, 2 }
 0x251   :  { %v2711_v14 = vadd.f32 %v2710_v13, %v2709_v11 }
 0x253   :  { %v2712_v15 = vrot.slane %v2711_v14, 1 }
 0x255   :  { %v2713_v17 = vadd.f32 %v2712_v15, %v2711_v14 }
 0x257   :  { %v2716_v19 = vmul.f32 0.00390625, %v2713_v17 }
 0x259   :  { %v2718_v20 = vpack.c.bf16 %v2716_v19, %v2716_v19  ;;  %v2840_v21 = vsel %vm2746_vm3, %v2716_v19, %v2715_v16 }
 0x25a   :  { %2841 = vrot.lane.b32.xlu0 %v2840_v21, %s3307_s4 }
 0x25b   :  { %v2745_v24 = vunpack.c.l.b16 %v2718_v20 }
 0x25d   :  { %v2747_v25 = vsel %vm2746_vm3, %v2745_v24, %v2744_v23 }
 0x25e   :  { %v2748_v26 = vpack.c.b16 %v2747_v25, %v2747_v25 }
 0x260   :  { %3255 = vmatmul.mubr.bf16.vlgmr.msra.gmra.mrb[64].mxu0 %v2748_v26 }
 0x2cc   :  { %v2842_v31 = vpop.permute.xlu0 %2841 }
 0x333   :  { %v2832_v28 = vpop.f32.mrb[64].mxu0 }
 0x334   :  { %v2833_v29 = vadd.f32 %v3016_v27, %v2832_v28  ;;  %v3256_v30 = vpop.f32.mrb[65].mxu0 }
 0x335   :  { %v2835_v32 = vpop.f32.mrb[66].mxu0 }
 0x336   :  { %v2844_v33 = vsel %vm1686_vm1, %v2833_v29, %v2842_v31  ;;  %v3257_v34 = vpop.f32.mrb[67].mxu0 }
 0x337   :  { %2846 = vst.msk [vmem:[%s3983_s8] sm:$0x3] %vm2845_vm4, %v2844_v33 }

</bundles_post_ra>
